<compile_context>
chip_gen: v5e
topology: v5e:2x2
jax: 0.10.0
libtpu: 0.0.40
codegen_flags: <defaults>
</compile_context>

<pallas_src>
import functools

import jax
import jax.numpy as jnp
import numpy as np
from jax.experimental import pallas as pl
from jax.experimental.pallas import tpu as pltpu


# ----------------------------------------------------------------------------
# Fused kernel: both axial self-attention passes for one image per grid step.
#   x block : (1, H, W, D)
#   wqkv    : (D, 6*dh)  columns = [Wq1*s | Wk1 | Wv1 | Wq2*s | Wk2 | Wv2]
#   wo      : (2*dh, D)  rows    = [Wo1 ; Wo2]
#   bo      : (1, D)     bo1 + bo2
#   vmask   : (G, dh)    head block-diagonal mask  (G = heads * H * W)
#   bias1/2 : (S, G)     additive axial masks (0 allowed, -1e30 disallowed)
# ----------------------------------------------------------------------------
def _fused_axial_attn_kernel(x_ref, wqkv_ref, wo_ref, bo_ref,
                             vmask_ref, bias1_ref, bias2_ref, o_ref,
                             *, heads, dim_heads):
    _, H, W, D = x_ref.shape
    S = H * W
    E = dim_heads
    dh = heads * E
    f32 = jnp.float32

    x = x_ref[...].reshape(S, D).astype(f32)            # (S, D)
    vmask = vmask_ref[...]                               # (G, dh)

    # One fused projection for both passes (scale already folded into q cols).
    qkv = jnp.dot(x, wqkv_ref[...], preferred_element_type=f32)   # (S, 6*dh)

    def attend(off, bias):
        q = qkv[:, off:off + dh]                         # (S, dh)  pre-scaled
        k = qkv[:, off + dh:off + 2 * dh]                # (S, dh)
        v = qkv[:, off + 2 * dh:off + 3 * dh]            # (S, dh)

        # Block-diagonal K / V: per-head attention as one wide matmul each.
        kt = jnp.concatenate([k] * heads, axis=0) * vmask      # (G, dh)
        vt = jnp.concatenate([v] * heads, axis=0) * vmask      # (G, dh)

        # q @ kt^T via transposed-RHS contraction (MXU does the transpose).
        dots = jax.lax.dot_general(q, kt, (((1,), (1,)), ((), ())),
                                   preferred_element_type=f32)  # (S, G)
        dots = dots + bias
        m = jnp.max(dots, axis=-1, keepdims=True)               # row max
        p = jnp.exp(dots - m)                                   # masked -> 0
        # Per-head denominator, broadcast over each head's E lanes: (S, dh).
        denom = jnp.dot(p, vmask, preferred_element_type=f32)
        num = jnp.dot(p, vt, preferred_element_type=f32)        # (S, dh)
        return num * pl.reciprocal(jnp.maximum(denom, 1e-30), approx=True)

    a1 = attend(0, bias1_ref[...])          # attend along H (same column w)
    a2 = attend(3 * dh, bias2_ref[...])     # attend along W (same row h)

    attn = jnp.concatenate([a1, a2], axis=1)                    # (S, 2*dh)
    out = jnp.dot(attn, wo_ref[...], preferred_element_type=f32) + bo_ref[...]
    o_ref[...] = out.reshape(o_ref.shape).astype(o_ref.dtype)


# ----------------------------------------------------------------------------
# Wrapper: fuses weights and precomputes all grid-invariant masks at trace
# time; one pallas_call covers both axial passes for the whole batch.
# ----------------------------------------------------------------------------
def axial_attention_forward(x, params_per_axis, heads, dim_heads):
    B, H, W, D = x.shape
    E = dim_heads
    dh = heads * E
    S = H * W
    G = heads * S
    f32 = jnp.float32
    scale = float(E) ** -0.5

    wq1, wkv1, wo1, bo1 = params_per_axis[0]   # pass 1: attend along H
    wq2, wkv2, wo2, bo2 = params_per_axis[1]   # pass 2: attend along W

    # Fused projection weights: [q1*s | k1 | v1 | q2*s | k2 | v2].
    wqkv = jnp.concatenate(
        [wq1.astype(f32) * scale, wkv1.astype(f32),
         wq2.astype(f32) * scale, wkv2.astype(f32)], axis=1)      # (D, 6*dh)
    wo_cat = jnp.concatenate([wo1, wo2], axis=0).astype(f32)      # (2*dh, D)
    bo_sum = (bo1 + bo2).reshape(1, D).astype(f32)                # (1, D)

    # ---- grid-invariant masks, built once on host (hoisted out of kernel) --
    g = np.arange(G)
    f = np.arange(dh)
    vmask = (g[:, None] // S == f[None, :] // E).astype(np.float32)   # (G, dh)

    q_pos = np.arange(S)[:, None]          # query flat position h*W + w
    k_pos = (np.arange(G) % S)[None, :]    # key flat position within its head
    neg = np.float32(-1e30)
    zero = np.float32(0.0)
    bias1 = np.where((q_pos % W) == (k_pos % W), zero, neg)   # same column w
    bias2 = np.where((q_pos // W) == (k_pos // W), zero, neg)  # same row h

    vmask = jnp.asarray(vmask, f32)
    bias1 = jnp.asarray(bias1, f32)
    bias2 = jnp.asarray(bias2, f32)

    kernel = functools.partial(_fused_axial_attn_kernel,
                               heads=heads, dim_heads=dim_heads)
    const2 = lambda b: (0, 0)
    return pl.pallas_call(
        kernel,
        out_shape=jax.ShapeDtypeStruct((B, H, W, D), x.dtype),
        grid=(B,),
        in_specs=[
            pl.BlockSpec((1, H, W, D), lambda b: (b, 0, 0, 0)),
            pl.BlockSpec((D, 6 * dh), const2),
            pl.BlockSpec((2 * dh, D), const2),
            pl.BlockSpec((1, D), const2),
            pl.BlockSpec((G, dh), const2),
            pl.BlockSpec((S, G), const2),
            pl.BlockSpec((S, G), const2),
        ],
        out_specs=pl.BlockSpec((1, H, W, D), lambda b: (b, 0, 0, 0)),
        compiler_params=pltpu.CompilerParams(
            dimension_semantics=("parallel",)),
    )(x, wqkv, wo_cat, bo_sum, vmask, bias1, bias2)


# ----------------------------------------------------------------------------
# Pure-JAX reference (mirrors the PyTorch forward exactly) for validation.
# ----------------------------------------------------------------------------
def _self_attention_ref(x3, params, heads, dim_heads):
    wq, wkv, wo, bo = params
    dh = heads * dim_heads
    q = x3 @ wq
    kv = x3 @ wkv
    k, v = kv[..., :dh], kv[..., dh:]
    b, t, _ = q.shape

    def merge(z):
        return (z.reshape(b, t, heads, dim_heads)
                 .transpose(0, 2, 1, 3)
                 .reshape(b * heads, t, dim_heads))

    q, k, v = merge(q), merge(k), merge(v)
    dots = jnp.einsum('bie,bje->bij', q, k) * dim_heads ** -0.5
    dots = jax.nn.softmax(dots, axis=-1)
    out = jnp.einsum('bij,bje->bie', dots, v)
    out = (out.reshape(b, heads, t, dim_heads)
              .transpose(0, 2, 1, 3)
              .reshape(b, t, dh))
    return out @ wo + bo


def _axial_attention_ref(x, params_per_axis, heads, dim_heads):
    B, H, W, D = x.shape
    xa = jnp.transpose(x, (0, 2, 1, 3)).reshape(B * W, H, D)
    ya = _self_attention_ref(xa, params_per_axis[0], heads, dim_heads)
    ya = jnp.transpose(ya.reshape(B, W, H, D), (0, 2, 1, 3))
    xb = x.reshape(B * H, W, D)
    yb = _self_attention_ref(xb, params_per_axis[1], heads, dim_heads)
    return ya + yb.reshape(B, H, W, D)


# ----------------------------------------------------------------------------
# Deterministic parameter construction (shapes from SelfAttention.__init__)
# ----------------------------------------------------------------------------
def make_params(key, dim, heads, dim_heads):
    dh = heads * dim_heads
    k1, k2, k3, k4 = jax.random.split(key, 4)
    s = 1.0 / np.sqrt(dim)
    wq = jax.random.uniform(k1, (dim, dh), jnp.float32, -s, s)       # to_q
    wkv = jax.random.uniform(k2, (dim, 2 * dh), jnp.float32, -s, s)  # to_kv
    so = 1.0 / np.sqrt(dh)
    wo = jax.random.uniform(k3, (dh, dim), jnp.float32, -so, so)     # to_out W
    bo = jax.random.uniform(k4, (1, dim), jnp.float32, -so, so)      # to_out b
    return (wq, wkv, wo, bo)


if __name__ == "__main__":
    # Small shapes consistent with the module: dim=32, heads=4, 8x8 spatial.
    B, H, W, DIM = 2, 8, 8, 32
    HEADS = 4
    DIM_HEADS = DIM // HEADS

    key = jax.random.PRNGKey(0)
    kx, kp1, kp2 = jax.random.split(key, 3)
    x = jax.random.normal(kx, (B, H, W, DIM), jnp.float32)

    params_per_axis = (make_params(kp1, DIM, HEADS, DIM_HEADS),
                       make_params(kp2, DIM, HEADS, DIM_HEADS))

    out = axial_attention_forward(x, params_per_axis, HEADS, DIM_HEADS)
    out = jax.block_until_ready(out)

    ref = _axial_attention_ref(x, params_per_axis, HEADS, DIM_HEADS)
    ref = jax.block_until_ready(ref)

    np.testing.assert_allclose(np.asarray(out), np.asarray(ref),
                               rtol=1e-2, atol=1e-2)
    assert out.shape == (B, H, W, DIM)
    print("KERNEL_OK")
</pallas_src>

<mosaic_0001>
module attributes {stable_mosaic.version = 11 : i64} {
  func.func @_fused_axial_attn_kernel(%arg0: i32, %arg1: memref<1x8x8x32xf32, #tpu.memory_space<vmem>>, %arg2: memref<32x192xf32, #tpu.memory_space<vmem>>, %arg3: memref<64x32xf32, #tpu.memory_space<vmem>>, %arg4: memref<1x32xf32, #tpu.memory_space<vmem>>, %arg5: memref<256x32xf32, #tpu.memory_space<vmem>>, %arg6: memref<64x256xf32, #tpu.memory_space<vmem>>, %arg7: memref<64x256xf32, #tpu.memory_space<vmem>>, %arg8: memref<1x8x8x32xf32, #tpu.memory_space<vmem>>) attributes {dimension_semantics = [#tpu.dimension_semantics<parallel>], iteration_bounds = array<i64: 2>, scalar_prefetch = 0 : i64, scratch_operands = 0 : i64, tpu.core_type = #tpu.core_type<tc>, window_params = [{transform_indices = @transform_0, window_bounds = array<i64: 1, 8, 8, 32>}, {pipeline_mode = #tpu.pipeline_mode<synchronous>, transform_indices = @transform_1, window_bounds = array<i64: 32, 192>}, {pipeline_mode = #tpu.pipeline_mode<synchronous>, transform_indices = @transform_2, window_bounds = array<i64: 64, 32>}, {pipeline_mode = #tpu.pipeline_mode<synchronous>, transform_indices = @transform_3, window_bounds = array<i64: 1, 32>}, {pipeline_mode = #tpu.pipeline_mode<synchronous>, transform_indices = @transform_4, window_bounds = array<i64: 256, 32>}, {pipeline_mode = #tpu.pipeline_mode<synchronous>, transform_indices = @transform_5, window_bounds = array<i64: 64, 256>}, {pipeline_mode = #tpu.pipeline_mode<synchronous>, transform_indices = @transform_6, window_bounds = array<i64: 64, 256>}, {transform_indices = @transform_7, window_bounds = array<i64: 1, 8, 8, 32>}]} {
    %c0 = arith.constant 0 : index
    %c0_0 = arith.constant 0 : index
    %c0_1 = arith.constant 0 : index
    %c0_2 = arith.constant 0 : index
    %0 = vector.load %arg1[%c0, %c0_0, %c0_1, %c0_2] : memref<1x8x8x32xf32, #tpu.memory_space<vmem>>, vector<1x8x8x32xf32>
    %1 = vector.shape_cast %0 : vector<1x8x8x32xf32> to vector<64x32xf32>
    %c0_3 = arith.constant 0 : index
    %c0_4 = arith.constant 0 : index
    %2 = vector.load %arg5[%c0_3, %c0_4] : memref<256x32xf32, #tpu.memory_space<vmem>>, vector<256x32xf32>
    %c0_5 = arith.constant 0 : index
    %c0_6 = arith.constant 0 : index
    %3 = vector.load %arg2[%c0_5, %c0_6] : memref<32x192xf32, #tpu.memory_space<vmem>>, vector<32x192xf32>
    %cst = arith.constant dense<0.000000e+00> : vector<64x192xf32>
    %4 = tpu.matmul %1, %3, %cst {dimension_numbers = #tpu.dot_dimension_numbers<[1], [0], [0], [1], [0, 0, 1, 1], [], []>} : vector<64x32xf32>, vector<32x192xf32>, vector<64x192xf32> -> vector<64x192xf32>
    %c0_7 = arith.constant 0 : index
    %c0_8 = arith.constant 0 : index
    %5 = vector.load %arg6[%c0_7, %c0_8] : memref<64x256xf32, #tpu.memory_space<vmem>>, vector<64x256xf32>
    %6 = vector.extract_strided_slice %4 {offsets = [0, 0], sizes = [64, 32], strides = [1, 1]} : vector<64x192xf32> to vector<64x32xf32>
    %7 = vector.extract_strided_slice %4 {offsets = [0, 32], sizes = [64, 32], strides = [1, 1]} : vector<64x192xf32> to vector<64x32xf32>
    %8 = vector.extract_strided_slice %4 {offsets = [0, 64], sizes = [64, 32], strides = [1, 1]} : vector<64x192xf32> to vector<64x32xf32>
    %9 = tpu.concatenate %7, %7, %7, %7 in 0 : vector<64x32xf32>, vector<64x32xf32>, vector<64x32xf32>, vector<64x32xf32> -> vector<256x32xf32>
    %10 = arith.mulf %9, %2 : vector<256x32xf32>
    %11 = tpu.concatenate %8, %8, %8, %8 in 0 : vector<64x32xf32>, vector<64x32xf32>, vector<64x32xf32>, vector<64x32xf32> -> vector<256x32xf32>
    %12 = arith.mulf %11, %2 : vector<256x32xf32>
    %cst_9 = arith.constant dense<0.000000e+00> : vector<64x256xf32>
    %13 = tpu.matmul %6, %10, %cst_9 {dimension_numbers = #tpu.dot_dimension_numbers<[1], [1], [0], [0], [0, 0, 1, 0], [], []>} : vector<64x32xf32>, vector<256x32xf32>, vector<64x256xf32> -> vector<64x256xf32>
    %14 = arith.addf %13, %5 : vector<64x256xf32>
    %cst_10 = arith.constant dense<0xFF800000> : vector<64xf32>
    %15 = vector.multi_reduction <maximumf>, %14, %cst_10 [1] : vector<64x256xf32> to vector<64xf32>
    %16 = vector.shape_cast %15 : vector<64xf32> to vector<64x1xf32>
    %17 = vector.broadcast %16 : vector<64x1xf32> to vector<64x256xf32>
    %18 = arith.subf %14, %17 : vector<64x256xf32>
    %19 = math.exp %18 : vector<64x256xf32>
    %cst_11 = arith.constant dense<0.000000e+00> : vector<64x32xf32>
    %20 = tpu.matmul %19, %2, %cst_11 {dimension_numbers = #tpu.dot_dimension_numbers<[1], [0], [0], [1], [0, 0, 1, 1], [], []>} : vector<64x256xf32>, vector<256x32xf32>, vector<64x32xf32> -> vector<64x32xf32>
    %cst_12 = arith.constant dense<0.000000e+00> : vector<64x32xf32>
    %21 = tpu.matmul %19, %12, %cst_12 {dimension_numbers = #tpu.dot_dimension_numbers<[1], [0], [0], [1], [0, 0, 1, 1], [], []>} : vector<64x256xf32>, vector<256x32xf32>, vector<64x32xf32> -> vector<64x32xf32>
    %cst_13 = arith.constant 1.000000e-30 : f32
    %22 = vector.broadcast %cst_13 : f32 to vector<64x32xf32>
    %23 = arith.maximumf %20, %22 : vector<64x32xf32>
    %24 = tpu.reciprocal %23 {approx = true} : vector<64x32xf32> -> vector<64x32xf32>
    %25 = arith.mulf %21, %24 : vector<64x32xf32>
    %c0_14 = arith.constant 0 : index
    %c0_15 = arith.constant 0 : index
    %26 = vector.load %arg7[%c0_14, %c0_15] : memref<64x256xf32, #tpu.memory_space<vmem>>, vector<64x256xf32>
    %27 = vector.extract_strided_slice %4 {offsets = [0, 96], sizes = [64, 32], strides = [1, 1]} : vector<64x192xf32> to vector<64x32xf32>
    %28 = vector.extract_strided_slice %4 {offsets = [0, 128], sizes = [64, 32], strides = [1, 1]} : vector<64x192xf32> to vector<64x32xf32>
    %29 = vector.extract_strided_slice %4 {offsets = [0, 160], sizes = [64, 32], strides = [1, 1]} : vector<64x192xf32> to vector<64x32xf32>
    %30 = tpu.concatenate %28, %28, %28, %28 in 0 : vector<64x32xf32>, vector<64x32xf32>, vector<64x32xf32>, vector<64x32xf32> -> vector<256x32xf32>
    %31 = arith.mulf %30, %2 : vector<256x32xf32>
    %32 = tpu.concatenate %29, %29, %29, %29 in 0 : vector<64x32xf32>, vector<64x32xf32>, vector<64x32xf32>, vector<64x32xf32> -> vector<256x32xf32>
    %33 = arith.mulf %32, %2 : vector<256x32xf32>
    %cst_16 = arith.constant dense<0.000000e+00> : vector<64x256xf32>
    %34 = tpu.matmul %27, %31, %cst_16 {dimension_numbers = #tpu.dot_dimension_numbers<[1], [1], [0], [0], [0, 0, 1, 0], [], []>} : vector<64x32xf32>, vector<256x32xf32>, vector<64x256xf32> -> vector<64x256xf32>
    %35 = arith.addf %34, %26 : vector<64x256xf32>
    %cst_17 = arith.constant dense<0xFF800000> : vector<64xf32>
    %36 = vector.multi_reduction <maximumf>, %35, %cst_17 [1] : vector<64x256xf32> to vector<64xf32>
    %37 = vector.shape_cast %36 : vector<64xf32> to vector<64x1xf32>
    %38 = vector.broadcast %37 : vector<64x1xf32> to vector<64x256xf32>
    %39 = arith.subf %35, %38 : vector<64x256xf32>
    %40 = math.exp %39 : vector<64x256xf32>
    %cst_18 = arith.constant dense<0.000000e+00> : vector<64x32xf32>
    %41 = tpu.matmul %40, %2, %cst_18 {dimension_numbers = #tpu.dot_dimension_numbers<[1], [0], [0], [1], [0, 0, 1, 1], [], []>} : vector<64x256xf32>, vector<256x32xf32>, vector<64x32xf32> -> vector<64x32xf32>
    %cst_19 = arith.constant dense<0.000000e+00> : vector<64x32xf32>
    %42 = tpu.matmul %40, %33, %cst_19 {dimension_numbers = #tpu.dot_dimension_numbers<[1], [0], [0], [1], [0, 0, 1, 1], [], []>} : vector<64x256xf32>, vector<256x32xf32>, vector<64x32xf32> -> vector<64x32xf32>
    %cst_20 = arith.constant 1.000000e-30 : f32
    %43 = vector.broadcast %cst_20 : f32 to vector<64x32xf32>
    %44 = arith.maximumf %41, %43 : vector<64x32xf32>
    %45 = tpu.reciprocal %44 {approx = true} : vector<64x32xf32> -> vector<64x32xf32>
    %46 = arith.mulf %42, %45 : vector<64x32xf32>
    %47 = tpu.concatenate %25, %46 in 1 : vector<64x32xf32>, vector<64x32xf32> -> vector<64x64xf32>
    %c0_21 = arith.constant 0 : index
    %c0_22 = arith.constant 0 : index
    %48 = vector.load %arg3[%c0_21, %c0_22] : memref<64x32xf32, #tpu.memory_space<vmem>>, vector<64x32xf32>
    %cst_23 = arith.constant dense<0.000000e+00> : vector<64x32xf32>
    %49 = tpu.matmul %47, %48, %cst_23 {dimension_numbers = #tpu.dot_dimension_numbers<[1], [0], [0], [1], [0, 0, 1, 1], [], []>} : vector<64x64xf32>, vector<64x32xf32>, vector<64x32xf32> -> vector<64x32xf32>
    %c0_24 = arith.constant 0 : index
    %c0_25 = arith.constant 0 : index
    %50 = vector.load %arg4[%c0_24, %c0_25] : memref<1x32xf32, #tpu.memory_space<vmem>>, vector<1x32xf32>
    %51 = vector.broadcast %50 : vector<1x32xf32> to vector<64x32xf32>
    %52 = arith.addf %49, %51 : vector<64x32xf32>
    %53 = vector.shape_cast %52 : vector<64x32xf32> to vector<1x8x8x32xf32>
    %c0_26 = arith.constant 0 : index
    %c0_27 = arith.constant 0 : index
    %c0_28 = arith.constant 0 : index
    %c0_29 = arith.constant 0 : index
    %54 = vector.load %arg8[%c0_26, %c0_27, %c0_28, %c0_29] : memref<1x8x8x32xf32, #tpu.memory_space<vmem>>, vector<1x8x8x32xf32>
    tpu.vector_store %arg8[%c0_26, %c0_27, %c0_28, %c0_29], %53 {strides = array<i32>} : memref<1x8x8x32xf32, #tpu.memory_space<vmem>>, vector<1x8x8x32xf32>,
    return
  }
  func.func @transform_0(%arg0: i32) -> (i32, i32, i32, i32) {
    %c0_i32 = arith.constant 0 : i32
    %c0_i32_0 = arith.constant 0 : i32
    %c0_i32_1 = arith.constant 0 : i32
    %c0_i32_2 = arith.constant 0 : i32
    return %arg0, %c0_i32, %c0_i32_0, %c0_i32_1 : i32, i32, i32, i32
  }
  func.func @transform_1(%arg0: i32) -> (i32, i32) {
    %c0_i32 = arith.constant 0 : i32
    %c0_i32_0 = arith.constant 0 : i32
    %c0_i32_1 = arith.constant 0 : i32
    return %c0_i32, %c0_i32_0 : i32, i32
  }
  func.func @transform_2(%arg0: i32) -> (i32, i32) {
    %c0_i32 = arith.constant 0 : i32
    %c0_i32_0 = arith.constant 0 : i32
    %c0_i32_1 = arith.constant 0 : i32
    return %c0_i32, %c0_i32_0 : i32, i32
  }
  func.func @transform_3(%arg0: i32) -> (i32, i32) {
    %c0_i32 = arith.constant 0 : i32
    %c0_i32_0 = arith.constant 0 : i32
    %c0_i32_1 = arith.constant 0 : i32
    return %c0_i32, %c0_i32_0 : i32, i32
  }
  func.func @transform_4(%arg0: i32) -> (i32, i32) {
    %c0_i32 = arith.constant 0 : i32
    %c0_i32_0 = arith.constant 0 : i32
    %c0_i32_1 = arith.constant 0 : i32
    return %c0_i32, %c0_i32_0 : i32, i32
  }
  func.func @transform_5(%arg0: i32) -> (i32, i32) {
    %c0_i32 = arith.constant 0 : i32
    %c0_i32_0 = arith.constant 0 : i32
    %c0_i32_1 = arith.constant 0 : i32
    return %c0_i32, %c0_i32_0 : i32, i32
  }
  func.func @transform_6(%arg0: i32) -> (i32, i32) {
    %c0_i32 = arith.constant 0 : i32
    %c0_i32_0 = arith.constant 0 : i32
    %c0_i32_1 = arith.constant 0 : i32
    return %c0_i32, %c0_i32_0 : i32, i32
  }
  func.func @transform_7(%arg0: i32) -> (i32, i32, i32, i32) {
    %c0_i32 = arith.constant 0 : i32
    %c0_i32_0 = arith.constant 0 : i32
    %c0_i32_1 = arith.constant 0 : i32
    %c0_i32_2 = arith.constant 0 : i32
    return %arg0, %c0_i32, %c0_i32_0, %c0_i32_1 : i32, i32, i32, i32
  }
}

</mosaic_0001>

<bundles_post_ra>
// kernel: tpu_custom_call.1
= control target key start
LH: loop header
LB: loop body
LE: loop exit
PB: predicated region body
PF: predicated region fallthrough
CT: control target
= control target key end

     0   :  { %12 = vsyncpa [#allocation3], 0  ;;  %s4544_s0 = inlined_call_operand.vmem [shape: f32[2,8,8,32], index: 0, kind: input, shape index: {}]   ;;  %s4545_s1 = inlined_call_operand.vmem [shape: f32[32,192], index: 1, kind: input, shape index: {}]   ;;  %s4546_s2 = inlined_call_operand.vmem [shape: f32[64,32], index: 2, kind: input, shape index: {}]   ;;  %s4547_s3 = inlined_call_operand.vmem [shape: f32[1,32], index: 3, kind: input, shape index: {}]   ;;  %s4548_s4 = inlined_call_operand.vmem [shape: f32[256,32], index: 4, kind: input, shape index: {}]   ;;  %s4549_s5 = inlined_call_operand.vmem [shape: f32[64,256], index: 5, kind: input, shape index: {}]   ;;  %s4550_s6 = inlined_call_operand.hbm [shape: f32[64,256], index: 6, kind: input, shape index: {}]   ;;  %s4551_s7 = inlined_call_operand.hbm [shape: f32[2,8,8,32], index: 7, kind: output, shape index: {}]  }
   0x1   :  { %13 = vsyncpa [#allocation4], 0 }
   0x2   :  { %15 = vsyncpa [#allocation4 + $0x1], 0  ;;  %s2953_s24 = smov 0   ;;  %s2955_s25 = smov 0  }
   0x3   :  { %s2957_s26 = smov 0   ;;  %s2959_s27 = smov 0  }
   0x4 LB: > { %s2974_s28 = sadd.s32 4294967295, %s2903_s27   ;;  %s2301_s29 = sadd.s32 4294967294, %s2903_s27   ;;  %s2903_s27 = sphi %s2959_s27, %s4738_s27   ;;  %s2899_s26 = sphi %s2957_s26, %s4737_s26   ;;  %s2895_s25 = sphi %s2955_s25, %s4736_s25   ;;  %s2891_s24 = sphi %s2953_s24, %s4735_s24  }
   0x5   : > { %s2978_s30 = sadd.s32 1, %s2903_s27   ;;  %s180_s8 = sadd.s32 1, %s2899_s26 }
   0x6   : > { %s177_s9 = ssub.s32 %s2903_s27, %s2978_s30  ;;  %p190_p0 = scmp.ne.s32.totalorder %s2899_s26, %s2895_s25 }
   0x7   : > { %p178_p1 = scmp.eq.s32.totalorder %s177_s9, 0  ;;  %p191_p2 = scmp.eq.s32.totalorder %s2974_s28, 1 }
   0x8   : > { %p196_p3 = scmp.ne.s32.totalorder %s2895_s25, %s2891_s24  ;;  %p197_p4 = scmp.eq.s32.totalorder %s2301_s29, 1 }
   0x9   : > { %s2989_s10 = scalar_select %p178_p1, %s2899_s26, %s180_s8  }
   0xa   : > { %p2991_p5 = por %p191_p2, %p190_p0  ;;  %p2995_p6 = por %p197_p4, %p196_p3 }
   0xb   : > { %p2302_p7 = scmp.ge.s32.totalorder %s2903_s27, 1  ;;  %p204_p8 = scmp.lt.s32.totalorder %s2903_s27, 3 }
   0xc   : > { %p2475_p9 = scmp.eq.s32.totalorder %s2974_s28, 0  ;;  %s230_s15 = sshll.u32 %s4550_s6, 4  ;;  %s231_s15 = int_to_ptr.hbm [resolvable:$true] %s230_s15 }
   0xd   : > { %p205_p10 = pnand %p2302_p7, %p204_p8  ;;  %s2905_s16 = smov [#allocation2]  }
   0xe   : > { %s232_s17 = sshll.u32 %s2905_s16, 4  ;;  %s2906_s18 = smov 256   ;;  %s233_s17 = int_to_ptr.vmem [resolvable:$true] %s232_s17 }
   0xf   : > { %p2467_p11 = pneg %p205_p10  ;;  %s2907_s19 = smov 16  }
  0x10   : > { %256 = sbr.rel (%p205_p10) target bundleno = 1618 (0x652), region = 48 }
  0x11   : > { %p2468_p12 = pnand %p2475_p9, %p2467_p11 }
  0x13   : > { %2470 = dma.hbm_to_vmem [thread:$0]  (!%p2468_p12), %s231_s15, 2048, %s233_s17, [#allocation3], %s2906_s18, %s2906_s18, %s2907_s19  }
  0x15   : > { %2882 = dma.done.wait (%p2475_p9), [#allocation3], 2048  }
  0x16   : > { %2884 = vsyncadd (%p2475_p9), [#allocation3], 4294965248  ;;  %p289_p13 = scmp.lt.s32.totalorder %s2974_s28, 1  ;;  %v340_v0 = vld [vmem:[%s4545_s1 + $0x30] sm:$0xff]  ;;  %v341_v1 = vld [vmem:[%s4545_s1 + $0x38] sm:$0xff]  ;;  %vm342_vm0 = vcmask 261120  }
  0x17   : > { %v3022_v2 = vld [vmem:[%s4548_s4 + $0x78] sm:$0xff]  ;;  %379 = vmatpush.msra.mxu0 %v340_v0  ;;  %420 = vmatpush.msra.mxu1 %v341_v1  ;;  %v3027_v3 = vld [vmem:[%s4548_s4 + $0x70] sm:$0xff]  ;;  %v3032_v4 = vld [vmem:[%s4548_s4 + $0x68] sm:$0xff]  ;;  %s2910_s19 = smov 64   ;;  %vm2137_vm1 = vcmask 523264   ;;  %s2436_s16 = sshll.u32 %s2974_s28, 6 }
  0x18   : > { %s290_s20 = scalar_select %p289_p13, %s2974_s28, 1  ;;  %v338_v5 = vld [vmem:[%s4545_s1 + $0x20] sm:$0xff]  ;;  %v339_v6 = vld [vmem:[%s4545_s1 + $0x28] sm:$0xff]  ;;  %v336_v7 = vld [vmem:[%s4545_s1 + $0x10] sm:$0xff] }
  0x19   : > { %380 = vmatpush.msra.mxu0 %v338_v5  ;;  %v337_v8 = vld [vmem:[%s4545_s1 + $0x18] sm:$0xff]  ;;  %421 = vmatpush.msra.mxu1 %v339_v6  ;;  %v334_v9 = vld [vmem:[%s4545_s1] sm:$0xff]  ;;  %v335_v10 = vld [vmem:[%s4545_s1 + $0x8] sm:$0xff]  ;;  %s2223_s18 = scalar_lea.hbm %s4551_s7, %s2436_s16  ;;  %s2857_s9 = scalar_lea.hbm %s4551_s7, 128 }
  0x1a   : > { %s2435_s21 = sshll.u32 %s290_s20, 6  ;;  %s2908_s20 = smov 32   ;;  %v3067_v12 = vld [vmem:[%s4548_s4 + $0xf8] sm:$0xff]  ;;  %v3072_v13 = vld [vmem:[%s4548_s4 + $0xf0] sm:$0xff]  ;;  %v3078_v14 = vld [vmem:[%s4548_s4 + $0xe8] sm:$0xff] }
  0x1b   : > { %527 = vrot.lane.b32.xlu0 %v3022_v2, %s2908_s20  ;;  %525 = vrot.lane.b32.xlu1 %v3027_v3, %s2908_s20  ;;  %s3050_s14 = scalar_lea.vmem %s4544_s0, %s2435_s21  ;;  %v3096_v16 = vld [vmem:[%s4548_s4 + $0xe0] sm:$0xff]  ;;  %v3108_v18 = vld [vmem:[%s4548_s4 + $0x58] sm:$0xff]  ;;  %s2226_s21 = sshll.u32 %s2223_s18, 4  ;;  %s2227_s21 = int_to_ptr.hbm [resolvable:$true] %s2226_s21 }
  0x1c   : > { %523 = vrot.lane.b32.xlu2 %v3032_v4, %s2908_s20  ;;  %381 = vmatpush.msra.mxu0 %v336_v7  ;;  %v294_v11 = vld [vmem:[%s3050_s14] sm:$0xff]  ;;  %v295_v15 = vld [vmem:[%s3050_s14 + $0x8] sm:$0xff]  ;;  %v3122_v19 = vld [vmem:[%s4548_s4 + $0xd8] sm:$0xff]  ;;  %s2851_s28 = sshra.s32 %s2227_s21, 4  ;;  %s2852_s28 = int_to_ptr.hbm [resolvable:$true] %s2851_s28 }
  0x1d   : > { %422 = vmatpush.msra.mxu1 %v337_v8  ;;  %v3101_v17 = vld [vmem:[%s4548_s4 + $0x60] sm:$0xff]  ;;  %v296_v20 = vld [vmem:[%s3050_s14 + $0x10] sm:$0xff]  ;;  %v3143_v23 = vld [vmem:[%s4548_s4 + $0x48] sm:$0xff]  ;;  %s2853_s23 = scalar_lea.hbm %s2852_s28, 64  ;;  %p2858_p3 = scmp.lt.s32.totalorder %s2852_s28, %s4551_s7 }
  0x1e   : > { %382 = vmatpush.msra.mxu0 %v334_v9  ;;  %v3129_v21 = vld [vmem:[%s4548_s4 + $0x50] sm:$0xff]  ;;  %v3154_v24 = vld [vmem:[%s4548_s4 + $0xc8] sm:$0xff]  ;;  %v3161_v25 = vld [vmem:[%s4548_s4 + $0x40] sm:$0xff]  ;;  %p2854_p0 = scmp.ne.s32.totalorder %s2852_s28, %s2853_s23  ;;  %p2859_p4 = scmp.lt.s32.totalorder %s2857_s9, %s2853_s23 }
  0x1f   : > { %423 = vmatpush.msra.mxu1 %v335_v10  ;;  %2310 = vmatmul.msk.f32.vlgmr.msra.gmra.mxu0 %vm342_vm0, %v294_v11  ;;  %v3135_v22 = vld [vmem:[%s4548_s4 + $0xd0] sm:$0xff]  ;;  %4620 = vst [vmem:[#allocation8_spill] sm:$0xff] %v3154_v24  ;;  %v3167_v26 = vld [vmem:[%s4548_s4 + $0xc0] sm:$0xff]  ;;  %v297_v27 = vld [vmem:[%s3050_s14 + $0x18] sm:$0xff] }
  0x20   : > { %2318 = vmatmul.msk.f32.vlgmr.msra.gmra.mxu1 %vm342_vm0, %v294_v11  ;;  %1091 = vmatpush.msrb.mxu0 %v3022_v2  ;;  %4621 = vst [vmem:[#allocation9_spill] sm:$0xff] %v3167_v26  ;;  %v3174_v28 = vld [vmem:[%s4548_s4 + $0x38] sm:$0xff]  ;;  %v3188_v30 = vld [vmem:[%s4548_s4 + $0x30] sm:$0xff]  ;;  %v3206_v32 = vld [vmem:[%s4548_s4 + $0x28] sm:$0xff]  ;;  %p2855_p1 = pnand %p2854_p0, %p2991_p5  ;;  %p2860_p7 = por %p2859_p4, %p2858_p3 }
  0x21   : > { %1132 = vmatpush.msrb.mxu1 %v3067_v12  ;;  %v3180_v29 = vld [vmem:[%s4548_s4 + $0xb8] sm:$0xff]  ;;  %v3199_v31 = vld [vmem:[%s4548_s4 + $0xb0] sm:$0xff]  ;;  %v3212_v33 = vld [vmem:[%s4548_s4 + $0xa8] sm:$0xff] }
  0x22   : > { %1092 = vmatpush.msrb.mxu0 %v3027_v3  ;;  %4622 = vst [vmem:[#allocation10_spill] sm:$0xff] %v3180_v29  ;;  %v298_v34 = vld [vmem:[%s3050_s14 + $0x20] sm:$0xff]  ;;  %v3233_v37 = vld [vmem:[%s4548_s4 + $0x18] sm:$0xff]  ;;  %v3251_v39 = vld [vmem:[%s4548_s4 + $0x10] sm:$0xff]  ;;  %p2856_p2 = pneg %p2855_p1 }
  0x23   : > { %559 = vrot.lane.b32.xlu0 %v3067_v12, %s2908_s20  ;;  %557 = vrot.lane.b32.xlu1 %v3072_v13, %s2908_s20  ;;  %4623 = vst [vmem:[#allocation11_spill] sm:$0xff] %v3199_v31  ;;  %v3219_v35 = vld [vmem:[%s4548_s4 + $0x20] sm:$0xff]  ;;  %v3244_v38 = vld [vmem:[%s4548_s4 + $0x98] sm:$0xff] }
  0x24   : > { %555 = vrot.lane.b32.xlu2 %v3078_v14, %s2908_s20  ;;  %1133 = vmatpush.msrb.mxu1 %v3072_v13  ;;  %4624 = vst [vmem:[#allocation12_spill] sm:$0xff] %v3212_v33  ;;  %v3225_v36 = vld [vmem:[%s4548_s4 + $0xa0] sm:$0xff]  ;;  %v3257_v40 = vld [vmem:[%s4548_s4 + $0x90] sm:$0xff]  ;;  %v299_v41 = vld [vmem:[%s3050_s14 + $0x28] sm:$0xff]  ;;  %p2861_p8 = pnand %p2860_p7, %p2856_p2 }
  0x25   : > { %1093 = vmatpush.msrb.mxu0 %v3032_v4  ;;  %4625 = vst [vmem:[#allocation13_spill] sm:$0xff] %v3225_v36  ;;  %v3264_v42 = vld [vmem:[%s4548_s4 + $0x8] sm:$0xff]  ;;  %v3283_v44 = vld [vmem:[%s4548_s4] sm:$0xff]  ;;  %v300_v45 = vld [vmem:[%s3050_s14 + $0x30] sm:$0xff] }
  0x26   : > { %1134 = vmatpush.msrb.mxu1 %v3078_v14  ;;  %4626 = vst [vmem:[#allocation14_spill] sm:$0xff] %v3244_v38  ;;  %v3270_v43 = vld [vmem:[%s4548_s4 + $0x88] sm:$0xff]  ;;  %v301_v46 = vld [vmem:[%s3050_s14 + $0x38] sm:$0xff]  ;;  %s2909_s14 = smov 96  }
  0x27   : > { %2311 = vmatmul.msk.f32.gmra.mxu0 %vm342_vm0, %v295_v15  ;;  %4627 = vst [vmem:[#allocation15_spill] sm:$0xff] %v3257_v40 }
  0x28   : > { %2319 = vmatmul.msk.f32.gmra.mxu1 %vm342_vm0, %v295_v15  ;;  %1094 = vmatpush.msrb.mxu0 %v3101_v17  ;;  %4628 = vst [vmem:[#allocation16_spill] sm:$0xff] %v3270_v43 }
  0x29   : > { %1135 = vmatpush.msrb.mxu1 %v3096_v16 }
  0x2a   : > { %1095 = vmatpush.msrb.mxu0 %v3108_v18 }
  0x2b   : > { %553 = vrot.lane.b32.xlu1 %v3096_v16, %s2908_s20  ;;  %521 = vrot.lane.b32.xlu0 %v3101_v17, %s2908_s20 }
  0x2c   : > { %519 = vrot.lane.b32.xlu2 %v3108_v18, %s2908_s20  ;;  %1136 = vmatpush.msrb.mxu1 %v3122_v19 }
  0x2d   : > { %1096 = vmatpush.msrb.mxu0 %v3129_v21 }
  0x2e   : > { %1137 = vmatpush.msrb.mxu1 %v3135_v22 }
  0x2f   : > { %2312 = vmatmul.msk.f32.gmra.mxu0 %vm342_vm0, %v296_v20 }
  0x30   : > { %2320 = vmatmul.msk.f32.gmra.mxu1 %vm342_vm0, %v296_v20  ;;  %1097 = vmatpush.msrb.mxu0 %v3143_v23 }
  0x31   : > { %1138 = vmatpush.msrb.mxu1 %v3154_v24 }
  0x32   : > { %1098 = vmatpush.msrb.mxu0 %v3161_v25 }
  0x33   : > { %551 = vrot.lane.b32.xlu0 %v3122_v19, %s2908_s20  ;;  %517 = vrot.lane.b32.xlu1 %v3129_v21, %s2908_s20 }
  0x34   : > { %549 = vrot.lane.b32.xlu2 %v3135_v22, %s2908_s20  ;;  %1139 = vmatpush.msrb.mxu1 %v3167_v26 }
  0x35   : > { %1099 = vmatpush.msrb.mxu0 %v3174_v28 }
  0x36   : > { %1140 = vmatpush.msrb.mxu1 %v3180_v29 }
  0x37   : > { %2313 = vmatmul.msk.f32.gmra.mxu0 %vm342_vm0, %v297_v27 }
  0x38   : > { %2321 = vmatmul.msk.f32.gmra.mxu1 %vm342_vm0, %v297_v27  ;;  %1100 = vmatpush.msrb.mxu0 %v3188_v30 }
  0x39   : > { %1141 = vmatpush.msrb.mxu1 %v3199_v31 }
  0x3a   : > { %1101 = vmatpush.msrb.mxu0 %v3206_v32 }
  0x3b   : > { %547 = vrot.lane.b32.xlu1 %v3154_v24, %s2908_s20  ;;  %515 = vrot.lane.b32.xlu0 %v3143_v23, %s2908_s20 }
  0x3c   : > { %513 = vrot.lane.b32.xlu2 %v3161_v25, %s2908_s20  ;;  %1142 = vmatpush.msrb.mxu1 %v3212_v33 }
  0x3d   : > { %1102 = vmatpush.msrb.mxu0 %v3219_v35 }
  0x3e   : > { %1143 = vmatpush.msrb.mxu1 %v3225_v36 }
  0x3f   : > { %2314 = vmatmul.msk.f32.gmra.mxu0 %vm342_vm0, %v298_v34 }
  0x40   : > { %2322 = vmatmul.msk.f32.gmra.mxu1 %vm342_vm0, %v298_v34  ;;  %1103 = vmatpush.msrb.mxu0 %v3233_v37 }
  0x41   : > { %1144 = vmatpush.msrb.mxu1 %v3244_v38 }
  0x42   : > { %1104 = vmatpush.msrb.mxu0 %v3251_v39 }
  0x43   : > { %545 = vrot.lane.b32.xlu0 %v3167_v26, %s2908_s20  ;;  %511 = vrot.lane.b32.xlu1 %v3174_v28, %s2908_s20 }
  0x44   : > { %543 = vrot.lane.b32.xlu2 %v3180_v29, %s2908_s20  ;;  %1145 = vmatpush.msrb.mxu1 %v3257_v40 }
  0x45   : > { %1105 = vmatpush.msrb.mxu0 %v3264_v42 }
  0x46   : > { %1146 = vmatpush.msrb.mxu1 %v3270_v43 }
  0x47   : > { %2315 = vmatmul.msk.f32.gmra.mxu0 %vm342_vm0, %v299_v41 }
  0x48   : > { %2323 = vmatmul.msk.f32.gmra.mxu1 %vm342_vm0, %v299_v41  ;;  %1106 = vmatpush.msrb.mxu0 %v3283_v44 }
  0x4b   : > { %541 = vrot.lane.b32.xlu1 %v3199_v31, %s2908_s20  ;;  %509 = vrot.lane.b32.xlu0 %v3188_v30, %s2908_s20 }
  0x4c   : > { %507 = vrot.lane.b32.xlu2 %v3206_v32, %s2908_s20 }
  0x4f   : > { %2316 = vmatmul.msk.f32.gmra.mxu0 %vm342_vm0, %v300_v45 }
  0x50   : > { %2324 = vmatmul.msk.f32.gmra.mxu1 %vm342_vm0, %v300_v45 }
  0x53   : > { %537 = vrot.lane.b32.xlu1 %v3225_v36, %s2908_s20  ;;  %539 = vrot.lane.b32.xlu0 %v3212_v33, %s2908_s20 }
  0x54   : > { %535 = vrot.lane.b32.xlu2 %v3244_v38, %s2908_s20 }
  0x57   : > { %2317 = vmatmul.msk.f32.gmra.mxu0 %vm342_vm0, %v301_v46 }
  0x58   : > { %2325 = vmatmul.msk.f32.gmra.mxu1 %vm342_vm0, %v301_v46 }
  0x5b   : > { %505 = vrot.lane.b32.xlu0 %v3219_v35, %s2908_s20  ;;  %503 = vrot.lane.b32.xlu1 %v3233_v37, %s2908_s20 }
  0x5c   : > { %501 = vrot.lane.b32.xlu2 %v3251_v39, %s2908_s20 }
  0x63   : > { %533 = vrot.lane.b32.xlu0 %v3257_v40, %s2908_s20  ;;  %531 = vrot.lane.b32.xlu1 %v3270_v43, %s2908_s20 }
  0x6b   : > { %499 = vrot.lane.b32.xlu0 %v3264_v42, %s2908_s20  ;;  %497 = vrot.lane.b32.xlu1 %v3283_v44, %s2908_s20 }
  0x76   : > { %v3314_v47 = vpop.permute.xlu2 %523 }
  0x77   : > { %4629 = vst [vmem:[#allocation17_spill] sm:$0xff] %v3314_v47 }
  0x7e   : > { %v3320_v50 = vpop.permute.xlu2 %555 }
  0x7f   : > { %4632 = vst [vmem:[#allocation20_spill] sm:$0xff] %v3320_v50 }
  0x86   : > { %v3326_v53 = vpop.permute.xlu2 %519 }
  0x87   : > { %4635 = vst [vmem:[#allocation23_spill] sm:$0xff] %v3326_v53 }
  0x8d   : > { %v3316_v48 = vpop.permute.xlu0 %527  ;;  %v3318_v49 = vpop.permute.xlu1 %525 }
  0x8e   : > { %4630 = vst [vmem:[#allocation18_spill] sm:$0xff] %v3316_v48  ;;  %v3336_v58 = vpop.permute.xlu2 %549 }
  0x8f   : > { %4631 = vst [vmem:[#allocation19_spill] sm:$0xff] %v3318_v49 }
  0x90   : > { %4640 = vst [vmem:[#allocation28_spill] sm:$0xff] %v3336_v58 }
  0x95   : > { %v3322_v51 = vpop.permute.xlu0 %559  ;;  %v3324_v52 = vpop.permute.xlu1 %557 }
  0x96   : > { %4633 = vst [vmem:[#allocation21_spill] sm:$0xff] %v3322_v51  ;;  %v3346_v63 = vpop.permute.xlu2 %513 }
  0x97   : > { %4634 = vst [vmem:[#allocation22_spill] sm:$0xff] %v3324_v52 }
  0x9c   : > { %v3332_v56 = vpop.f32.mrf.mxu0 }
  0x9d   : > { %v3328_v54 = vpop.permute.xlu1 %553  ;;  %v3330_v55 = vpop.permute.xlu0 %521  ;;  %4638 = vst [vmem:[#allocation26_spill] sm:$0xff] %v3332_v56 }
  0x9e   : > { %4636 = vst [vmem:[#allocation24_spill] sm:$0xff] %v3328_v54  ;;  %v3334_v57 = vpop.f32.mrf.mxu1  ;;  %v3370_v15 = vpop.permute.xlu2 %543 }
  0x9f   : > { %4637 = vst [vmem:[#allocation25_spill] sm:$0xff] %v3330_v55  ;;  %v3358_v7 = vmul.f32 %v3346_v63, %v3334_v57 }
  0xa0   : > { %4639 = vst [vmem:[#allocation27_spill] sm:$0xff] %v3334_v57 }
  0xa1   : > { %4647 = vst [vmem:[#allocation35_spill] sm:$0xff] %v3358_v7 }
  0xa4   : > { %v3342_v61 = vpop.f32.mrf.mxu0 }
  0xa5   : > { %v3338_v59 = vpop.permute.xlu0 %551  ;;  %v3340_v60 = vpop.permute.xlu1 %517  ;;  %4643 = vst [vmem:[#allocation31_spill] sm:$0xff] %v3342_v61 }
  0xa6   : > { %4641 = vst [vmem:[#allocation29_spill] sm:$0xff] %v3338_v59  ;;  %v3344_v62 = vpop.f32.mrf.mxu1  ;;  %v508_v41 = vpop.permute.xlu2 %507 }
  0xa7   : > { %4642 = vst [vmem:[#allocation30_spill] sm:$0xff] %v3340_v60 }
  0xa8   : > { %4644 = vst [vmem:[#allocation32_spill] sm:$0xff] %v3344_v62 }
  0xac   : > { %v3352_v5 = vpop.f32.mrf.mxu0 }
  0xad   : > { %v3348_v0 = vpop.permute.xlu1 %547  ;;  %v3350_v1 = vpop.permute.xlu0 %515 }
  0xae   : > { %4645 = vst [vmem:[#allocation33_spill] sm:$0xff] %v3348_v0  ;;  %v3354_v6 = vpop.f32.mrf.mxu1 }
  0xaf   : > { %4646 = vst [vmem:[#allocation34_spill] sm:$0xff] %v3350_v1 }
  0xb4   : > { %v3368_v11 = vpop.f32.mrf.mxu0 }
  0xb5   : > { %v3360_v8 = vpop.permute.xlu0 %545  ;;  %v3362_v9 = vpop.permute.xlu1 %511  ;;  %v620_v27 = vmul.f32 %v3338_v59, %v3368_v11  ;;  %v604_v34 = vmul.f32 %v3326_v53, %v3368_v11 }
  0xb6   : > { %v3366_v10 = vmul.f32 %v3360_v8, %v3334_v57  ;;  %v3372_v20 = vpop.f32.mrf.mxu1 }
  0xb7   : > { %839 = vrot.lane.b32.xlu0 %v620_v27, %s2909_s14  ;;  %807 = vrot.lane.b32.xlu2 %v604_v34, %s2909_s14  ;;  %v3399_v27 = vld [vmem:[%s4548_s4 + $0x80] sm:$0xff] }
  0xb8   : > { %4648 = vst [vmem:[#allocation36_spill] sm:$0xff] %v3366_v10  ;;  %1147 = vmatpush.msrb.mxu1 %v3399_v27 }
  0xbc   : > { %v3386_v43 = vpop.f32.mrf.mxu0 }
  0xbd   : > { %v3382_v45 = vpop.permute.xlu1 %541  ;;  %v3384_v46 = vpop.permute.xlu0 %509  ;;  %4649 = vst [vmem:[#allocation37_spill] sm:$0xff] %v3386_v43  ;;  %v621_v59 = vmul.f32 %v3328_v54, %v3386_v43  ;;  %v605_v53 = vmul.f32 %v3330_v55, %v3386_v43 }
  0xbe   : > { %v3392_v40 = vpop.f32.mrf.mxu1  ;;  %v536_v55 = vpop.permute.xlu2 %535 }
  0xbf   : > { %841 = vrot.lane.b32.xlu2 %v621_v59, %s2909_s14  ;;  %809 = vrot.lane.b32.xlu1 %v605_v53, %s2909_s14  ;;  %v3421_v36 = vmul.f32 %v536_v55, %v3372_v20 }
  0xc1   : > { %4652 = vst [vmem:[#allocation40_spill] sm:$0xff] %v3421_v36 }
  0xc4   : > { %v3406_v10 = vpop.f32.mrf.mxu0 }
  0xc5   : > { %v3402_v34 = vpop.permute.xlu1 %537  ;;  %v3404_v7 = vpop.permute.xlu0 %539  ;;  %4650 = vst [vmem:[#allocation38_spill] sm:$0xff] %v3406_v10  ;;  %v622_v54 = vmul.f32 %v3320_v50, %v3406_v10  ;;  %v606_v59 = vmul.f32 %v3314_v47, %v3406_v10 }
  0xc6   : > { %v3414_v53 = vpop.f32.mrf.mxu1  ;;  %v3418_v38 = vmul.f32 %v3402_v34, %v3392_v40 }
  0xc7   : > { %843 = vrot.lane.b32.xlu1 %v622_v54, %s2909_s14  ;;  %811 = vrot.lane.b32.xlu0 %v606_v59, %s2909_s14 }
  0xc8   : > { %4651 = vst [vmem:[#allocation39_spill] sm:$0xff] %v3418_v38  ;;  %v601_v38 = vmul.f32 %v3346_v63, %v3332_v56 }
  0xcc   : > { %v3429_v54 = vpop.f32.mrf.mxu0 }
  0xcd   : > { %v506_v33 = vpop.permute.xlu0 %505  ;;  %v504_v31 = vpop.permute.xlu1 %503  ;;  %v623_v59 = vmul.f32 %v3324_v52, %v3429_v54  ;;  %v607_v29 = vmul.f32 %v3318_v49, %v3429_v54  ;;  %v603_v52 = vmul.f32 %v3340_v60, %v3352_v5  ;;  %v615_v36 = vmul.f32 %v3382_v45, %v3429_v54 }
  0xce   : > { %v3424_v50 = vmul.f32 %v506_v33, %v3392_v40  ;;  %v3427_v47 = vmul.f32 %v504_v31, %v3372_v20  ;;  %v3441_v24 = vpop.f32.mrf.mxu1  ;;  %v597_v63 = vmul.f32 %v506_v33, %v3386_v43  ;;  %v614_v33 = vmul.f32 %v3404_v7, %v3406_v10 }
  0xcf   : > { %845 = vrot.lane.b32.xlu0 %v623_v59, %s2909_s14  ;;  %813 = vrot.lane.b32.xlu2 %v607_v29, %s2909_s14  ;;  %v618_v59 = vmul.f32 %v3348_v0, %v3342_v61 }
  0xd0   : > { %4653 = vst [vmem:[#allocation41_spill] sm:$0xff] %v3424_v50  ;;  %v3479_v50 = vmul.f32 %v508_v41, %v3414_v53 }
  0xd1   : > { %4654 = vst [vmem:[#allocation42_spill] sm:$0xff] %v3427_v47 }
  0xd2   : > { %4657 = vst [vmem:[#allocation45_spill] sm:$0xff] %v3479_v50 }
  0xd4   : > { %v3443_v62 = vpop.f32.mrf.mxu0 }
  0xd5   : > { %v624_v49 = vmul.f32 %v3322_v51, %v3443_v62  ;;  %v608_v26 = vmul.f32 %v3316_v48, %v3443_v62 }
  0xd6   : > { %v3454_v29 = vpop.f32.mrf.mxu1 }
  0xd7   : > { %805 = vrot.lane.b32.xlu0 %v603_v52, %s2909_s14  ;;  %847 = vrot.lane.b32.xlu2 %v624_v49, %s2909_s14  ;;  %v3460_v57 = vmul.f32 %v3362_v9, %v3454_v29  ;;  %v3464_v47 = vmul.f32 %v3370_v15, %v3454_v29  ;;  %v619_v52 = vmul.f32 %v3336_v58, %v3352_v5  ;;  %v452_v58 = vld [vmem:[%s4549_s5 + $0x18] sm:$0xff] }
  0xd8   : > { %815 = vrot.lane.b32.xlu1 %v608_v26, %s2909_s14  ;;  %v602_v49 = vmul.f32 %v3350_v1, %v3342_v61  ;;  %v617_v26 = vmul.f32 %v3360_v8, %v3332_v56  ;;  %v599_v8 = vmul.f32 %v3384_v46, %v3429_v54 }
  0xd9   : > { %4655 = vst [vmem:[#allocation43_spill] sm:$0xff] %v3460_v57  ;;  %v600_v57 = vmul.f32 %v3362_v9, %v3443_v62  ;;  %v616_v9 = vmul.f32 %v3370_v15, %v3443_v62 }
  0xda   : > { %4656 = vst [vmem:[#allocation44_spill] sm:$0xff] %v3464_v47  ;;  %v598_v47 = vmul.f32 %v508_v41, %v3406_v10  ;;  %v612_v41 = vmul.f32 %v536_v55, %v3368_v11 }
  0xdf   : > { %835 = vrot.lane.b32.xlu0 %v618_v59, %s2909_s14  ;;  %529 = vrot.lane.b32.xlu2 %v3399_v27, %s2908_s20  ;;  %v3483_v59 = vmul.f32 %v3404_v7, %v3414_v53 }
  0xe0   : > { %837 = vrot.lane.b32.xlu1 %v619_v52, %s2909_s14 }
  0xe1   : > { %4658 = vst [vmem:[#allocation46_spill] sm:$0xff] %v3483_v59 }
  0xe7   : > { %829 = vrot.lane.b32.xlu0 %v615_v36, %s2909_s14  ;;  %803 = vrot.lane.b32.xlu2 %v602_v49, %s2909_s14  ;;  %v3502_v36 = vmul.f32 %v3384_v46, %v3441_v24  ;;  %v3530_v46 = vpop.permute.xlu2 %501 }
  0xe8   : > { %801 = vrot.lane.b32.xlu1 %v601_v38, %s2909_s14  ;;  %v3506_v38 = vmul.f32 %v3382_v45, %v3441_v24  ;;  %v613_v45 = vmul.f32 %v3402_v34, %v3386_v43  ;;  %4663 = vst [vmem:[#allocation51_spill] sm:$0xff] %v3530_v46  ;;  %v595_v55 = vmul.f32 %v3530_v46, %v3352_v5  ;;  %v3539_v34 = vpop.permute.xlu1 %531 }
  0xe9   : > { %4659 = vst [vmem:[#allocation47_spill] sm:$0xff] %v3502_v36 }
  0xea   : > { %4660 = vst [vmem:[#allocation48_spill] sm:$0xff] %v3506_v38 }
  0xeb   : > { %4664 = vst [vmem:[#allocation52_spill] sm:$0xff] %v3539_v34 }
  0xef   : > { %833 = vrot.lane.b32.xlu2 %v617_v26, %s2909_s14  ;;  %799 = vrot.lane.b32.xlu0 %v600_v57, %s2909_s14  ;;  %v596_v26 = vmul.f32 %v504_v31, %v3368_v11  ;;  %v610_v31 = vmul.f32 %v3539_v34, %v3342_v61 }
  0xf0   : > { %795 = vrot.lane.b32.xlu1 %v598_v47, %s2909_s14  ;;  %v3517_v47 = vpop.permute.xlu0 %533 }
  0xf1   : > { %4661 = vst [vmem:[#allocation49_spill] sm:$0xff] %v3517_v47  ;;  %v611_v49 = vmul.f32 %v3517_v47, %v3352_v5 }
  0xf7   : > { %797 = vrot.lane.b32.xlu2 %v599_v8, %s2909_s14  ;;  %793 = vrot.lane.b32.xlu0 %v597_v63, %s2909_s14  ;;  %v3548_v63 = vpop.permute.xlu1 %497 }
  0xf8   : > { %831 = vrot.lane.b32.xlu1 %v616_v9, %s2909_s14  ;;  %v3528_v15 = vpop.permute.xlu0 %499  ;;  %4665 = vst [vmem:[#allocation53_spill] sm:$0xff] %v3548_v63  ;;  %v593_v8 = vmul.f32 %v3548_v63, %v3332_v56 }
  0xf9   : > { %4662 = vst [vmem:[#allocation50_spill] sm:$0xff] %v3528_v15  ;;  %v594_v7 = vmul.f32 %v3528_v15, %v3342_v61 }
  0xff   : > { %827 = vrot.lane.b32.xlu2 %v614_v33, %s2909_s14  ;;  %823 = vrot.lane.b32.xlu0 %v612_v41, %s2909_s14 }
 0x100   : > { %825 = vrot.lane.b32.xlu1 %v613_v45, %s2909_s14 }
 0x107   : > { %791 = vrot.lane.b32.xlu2 %v596_v26, %s2909_s14  ;;  %787 = vrot.lane.b32.xlu0 %v594_v7, %s2909_s14 }
 0x108   : > { %789 = vrot.lane.b32.xlu1 %v595_v55, %s2909_s14 }
 0x10f   : > { %821 = vrot.lane.b32.xlu2 %v611_v49, %s2909_s14 }
 0x110   : > { %819 = vrot.lane.b32.xlu1 %v610_v31, %s2909_s14 }
 0x111   : > { %v808_v9 = vpop.permute.xlu2 %807 }
 0x117   : > { %785 = vrot.lane.b32.xlu2 %v593_v8, %s2909_s14 }
 0x118   : > { %655 = vrot.lane.b32.xlu1 %v3022_v2, %s2910_s19 }
 0x119   : > { %v842_v33 = vpop.permute.xlu2 %841 }
 0x11f   : > { %1487 = vrot.lane.b32.xlu2 %v3332_v56, %s2908_s20 }
 0x120   : > { %651 = vrot.lane.b32.xlu1 %v3032_v4, %s2910_s19 }
 0x127   : > { %1491 = vrot.lane.b32.xlu2 %v3352_v5, %s2908_s20 }
 0x128   : > { %645 = vrot.lane.b32.xlu1 %v3129_v21, %s2910_s19 }
 0x129   : > { %v814_v41 = vpop.permute.xlu2 %813  ;;  %v840_v45 = vpop.permute.xlu0 %839 }
 0x12f   : > { %647 = vrot.lane.b32.xlu2 %v3108_v18, %s2910_s19 }
 0x130   : > { %641 = vrot.lane.b32.xlu1 %v3161_v25, %s2910_s19 }
 0x131   : > { %v848_v26 = vpop.permute.xlu2 %847  ;;  %v810_v7 = vpop.permute.xlu1 %809 }
 0x132   : > { %2350 = vmatpush.xpose.msk.msra.mxu3 %vm342_vm0, %v848_v26 }
 0x137   : > { %643 = vrot.lane.b32.xlu2 %v3143_v23, %s2910_s19 }
 0x138   : > { %1495 = vrot.lane.b32.xlu1 %v3386_v43, %s2908_s20 }
 0x139   : > { %v812_v55 = vpop.permute.xlu0 %811  ;;  %v3572_v49 = vpop.permute.xlu2 %529 }
 0x13a   : > { %4666 = vst [vmem:[#allocation54_spill] sm:$0xff] %v3572_v49  ;;  %v609_v31 = vmul.f32 %v3572_v49, %v3332_v56  ;;  %v844_v26 = vpop.permute.xlu1 %843 }
 0x13c   : > { %817 = vrot.lane.b32.xlu0 %v609_v31, %s2909_s14 }
 0x13f   : > { %637 = vrot.lane.b32.xlu2 %v3188_v30, %s2910_s19 }
 0x140   : > { %631 = vrot.lane.b32.xlu1 %v3233_v37, %s2910_s19 }
 0x141   : > { %v846_v8 = vpop.permute.xlu0 %845  ;;  %v804_v52 = vpop.permute.xlu2 %803 }
 0x142   : > { %2351 = vmatpush.xpose.msk.msra.mxu3 %vm342_vm0, %v846_v8 }
 0x144   : > { %1489 = vrot.lane.b32.xlu0 %v3342_v61, %s2908_s20 }
 0x146   : > { %2352 = vmatpush.xpose.msk.msra.mxu3 %vm342_vm0, %v844_v26 }
 0x147   : > { %633 = vrot.lane.b32.xlu2 %v3219_v35, %s2910_s19 }
 0x148   : > { %627 = vrot.lane.b32.xlu1 %v3264_v42, %s2910_s19 }
 0x149   : > { %v806_v31 = vpop.permute.xlu0 %805  ;;  %v834_v57 = vpop.permute.xlu2 %833 }
 0x14a   : > { %v816_v49 = vpop.permute.xlu1 %815  ;;  %2353 = vmatpush.xpose.msk.msra.mxu3 %vm342_vm0, %v842_v33 }
 0x14b   : > { %2326 = vmatpush.xpose.msk.msra.mxu2 %vm342_vm0, %v816_v49 }
 0x14c   : > { %653 = vrot.lane.b32.xlu0 %v3027_v3, %s2910_s19 }
 0x14e   : > { %2354 = vmatpush.xpose.msk.msra.mxu3 %vm342_vm0, %v840_v45 }
 0x14f   : > { %2327 = vmatpush.xpose.msk.msra.mxu2 %vm342_vm0, %v814_v41  ;;  %1497 = vrot.lane.b32.xlu2 %v3406_v10, %s2908_s20 }
 0x151   : > { %v836_v8 = vpop.permute.xlu0 %835  ;;  %v798_v26 = vpop.permute.xlu2 %797 }
 0x152   : > { %v838_v63 = vpop.permute.xlu1 %837 }
 0x153   : > { %2328 = vmatpush.xpose.msk.msra.mxu2 %vm342_vm0, %v812_v55  ;;  %2355 = vmatpush.xpose.msk.msra.mxu3 %vm342_vm0, %v838_v63 }
 0x154   : > { %649 = vrot.lane.b32.xlu0 %v3101_v17, %s2910_s19 }
 0x157   : > { %2329 = vmatpush.xpose.msk.msra.mxu2 %vm342_vm0, %v810_v7  ;;  %2356 = vmatpush.xpose.msk.msra.mxu3 %vm342_vm0, %v836_v8 }
 0x159   : > { %v830_v33 = vpop.permute.xlu0 %829  ;;  %v828_v45 = vpop.permute.xlu2 %827 }
 0x15a   : > { %v802_v41 = vpop.permute.xlu1 %801 }
 0x15b   : > { %2330 = vmatpush.xpose.msk.msra.mxu2 %vm342_vm0, %v808_v9  ;;  %2357 = vmatpush.xpose.msk.msra.mxu3 %vm342_vm0, %v834_v57 }
 0x15c   : > { %1493 = vrot.lane.b32.xlu0 %v3368_v11, %s2908_s20 }
 0x15f   : > { %2331 = vmatpush.xpose.msk.msra.mxu2 %vm342_vm0, %v806_v31 }
 0x161   : > { %v800_v55 = vpop.permute.xlu0 %799  ;;  %v792_v49 = vpop.permute.xlu2 %791 }
 0x162   : > { %v796_v63 = vpop.permute.xlu1 %795 }
 0x163   : > { %2332 = vmatpush.xpose.msk.msra.mxu2 %vm342_vm0, %v804_v52 }
 0x164   : > { %639 = vrot.lane.b32.xlu0 %v3174_v28, %s2910_s19 }
 0x167   : > { %2333 = vmatpush.xpose.msk.msra.mxu2 %vm342_vm0, %v802_v41 }
 0x169   : > { %v794_v57 = vpop.permute.xlu0 %793  ;;  %v822_v9 = vpop.permute.xlu2 %821 }
 0x16a   : > { %v832_v7 = vpop.permute.xlu1 %831 }
 0x16b   : > { %2334 = vmatpush.xpose.msk.msra.mxu2 %vm342_vm0, %v800_v55  ;;  %2358 = vmatpush.xpose.msk.msra.mxu3 %vm342_vm0, %v832_v7 }
 0x16c   : > { %635 = vrot.lane.b32.xlu0 %v3206_v32, %s2910_s19 }
 0x16f   : > { %2335 = vmatpush.xpose.msk.msra.mxu2 %vm342_vm0, %v798_v26  ;;  %2359 = vmatpush.xpose.msk.msra.mxu3 %vm342_vm0, %v830_v33 }
 0x171   : > { %v824_v31 = vpop.permute.xlu0 %823  ;;  %v786_v8 = vpop.permute.xlu2 %785 }
 0x172   : > { %v826_v52 = vpop.permute.xlu1 %825 }
 0x173   : > { %2336 = vmatpush.xpose.msk.msra.mxu2 %vm342_vm0, %v796_v63  ;;  %2360 = vmatpush.xpose.msk.msra.mxu3 %vm342_vm0, %v828_v45 }
 0x174   : > { %629 = vrot.lane.b32.xlu0 %v3251_v39, %s2910_s19 }
 0x177   : > { %2337 = vmatpush.xpose.msk.msra.mxu2 %vm342_vm0, %v794_v57  ;;  %2361 = vmatpush.xpose.msk.msra.mxu3 %vm342_vm0, %v826_v52 }
 0x179   : > { %v788_v26 = vpop.permute.xlu0 %787  ;;  %v3630_v33 = vpop.permute.xlu2 %1487 }
 0x17a   : > { %v790_v41 = vpop.permute.xlu1 %789  ;;  %4667 = vst [vmem:[#allocation55_spill] sm:$0xff] %v3630_v33  ;;  %v451_v33 = vld [vmem:[%s4549_s5 + $0x10] sm:$0xff] }
 0x17b   : > { %2338 = vmatpush.xpose.msk.msra.mxu2 %vm342_vm0, %v792_v49  ;;  %2362 = vmatpush.xpose.msk.msra.mxu3 %vm342_vm0, %v824_v31 }
 0x17c   : > { %625 = vrot.lane.b32.xlu0 %v3283_v44, %s2910_s19 }
 0x17f   : > { %2339 = vmatpush.xpose.msk.msra.mxu2 %vm342_vm0, %v790_v41  ;;  %2363 = vmatpush.xpose.msk.msra.mxu3 %vm342_vm0, %v822_v9 }
 0x181   : > { %v3639_v55 = vpop.permute.xlu2 %1491 }
 0x182   : > { %v820_v45 = vpop.permute.xlu1 %819  ;;  %4668 = vst [vmem:[#allocation56_spill] sm:$0xff] %v3639_v55 }
 0x183   : > { %2340 = vmatpush.xpose.msk.msra.mxu2 %vm342_vm0, %v788_v26  ;;  %2364 = vmatpush.xpose.msk.msra.mxu3 %vm342_vm0, %v820_v45 }
 0x187   : > { %2341 = vmatpush.xpose.msk.msra.mxu2 %vm342_vm0, %v786_v8 }
 0x189   : > { %v648_v7 = vpop.permute.xlu2 %647 }
 0x18a   : > { %v3635_v63 = vpop.permute.xlu1 %655  ;;  %2342 = vmatmul.msk.f32.vlgmr.msra.gmra.mxu2 %vm342_vm0, %v3332_v56  ;;  %v3646_v9 = vmul.f32 %v648_v7, %v3368_v11 }
 0x191   : > { %v644_v8 = vpop.permute.xlu2 %643 }
 0x192   : > { %v652_v49 = vpop.permute.xlu1 %651  ;;  %2343 = vmatmul.msk.f32.gmra.mxu2 %vm342_vm0, %v3342_v61  ;;  %v3656_v26 = vmul.f32 %v644_v8, %v3342_v61 }
 0x193   : > { %v3683_v7 = vmul.f32 %v652_v49, %v3406_v10 }
 0x199   : > { %v638_v50 = vpop.permute.xlu2 %637 }
 0x19a   : > { %v646_v57 = vpop.permute.xlu1 %645  ;;  %2344 = vmatmul.msk.f32.gmra.mxu2 %vm342_vm0, %v3352_v5  ;;  %v3697_v15 = vmul.f32 %v638_v50, %v3429_v54 }
 0x19b   : > { %v3649_v52 = vmul.f32 %v646_v57, %v3352_v5 }
 0x1a1   : > { %v634_v47 = vpop.permute.xlu2 %633 }
 0x1a2   : > { %v642_v41 = vpop.permute.xlu1 %641  ;;  %2345 = vmatmul.msk.f32.gmra.mxu2 %vm342_vm0, %v3368_v11 }
 0x1a3   : > { %v3659_v45 = vmul.f32 %v642_v41, %v3332_v56 }
 0x1aa   : > { %2346 = vmatmul.msk.f32.gmra.mxu2 %vm342_vm0, %v3386_v43 }
 0x1ae   : > { %v818_v57 = vpop.permute.xlu0 %817 }
 0x1af   : > { %2365 = vmatpush.xpose.msk.msra.mxu3 %vm342_vm0, %v818_v57 }
 0x1b2   : > { %2347 = vmatmul.msk.f32.gmra.mxu2 %vm342_vm0, %v3406_v10  ;;  %2366 = vmatmul.msk.f32.vlgmr.msra.gmra.mxu3 %vm342_vm0, %v3332_v56 }
 0x1b6   : > { %v3670_v8 = vpop.permute.xlu0 %1489 }
 0x1b7   : > { %4669 = vst [vmem:[#allocation57_spill] sm:$0xff] %v3670_v8 }
 0x1ba   : > { %2348 = vmatmul.msk.f32.gmra.mxu2 %vm342_vm0, %v3429_v54  ;;  %2367 = vmatmul.msk.f32.gmra.mxu3 %vm342_vm0, %v3342_v61 }
 0x1be   : > { %v3676_v41 = vpop.permute.xlu0 %653 }
 0x1c2   : > { %2349 = vmatmul.msk.f32.gmra.mxu2 %vm342_vm0, %v3443_v62  ;;  %2368 = vmatmul.msk.f32.gmra.mxu3 %vm342_vm0, %v3352_v5 }
 0x1c6   : > { %v650_v57 = vpop.permute.xlu0 %649 }
 0x1c7   : > { %v3686_v31 = vmul.f32 %v650_v57, %v3386_v43  ;;  %v449_v57 = vld [vmem:[%s4549_s5] sm:$0xff] }
 0x1ca   : > { %2369 = vmatmul.msk.f32.gmra.mxu3 %vm342_vm0, %v3368_v11 }
 0x1ce   : > { %v3692_v46 = vpop.permute.xlu0 %1493 }
 0x1cf   : > { %4670 = vst [vmem:[#allocation58_spill] sm:$0xff] %v3692_v46  ;;  %v3707_v46 = vmul.f32 %v634_v47, %v3386_v43  ;;  %v450_v47 = vld [vmem:[%s4549_s5 + $0x8] sm:$0xff] }
 0x1d2   : > { %2370 = vmatmul.msk.f32.gmra.mxu3 %vm342_vm0, %v3386_v43 }
 0x1d6   : > { %v640_v59 = vpop.permute.xlu0 %639 }
 0x1d7   : > { %v3700_v49 = vmul.f32 %v640_v59, %v3443_v62 }
 0x1da   : > { %2371 = vmatmul.msk.f32.gmra.mxu3 %vm342_vm0, %v3406_v10 }
 0x1de   : > { %v636_v34 = vpop.permute.xlu0 %635 }
 0x1df   : > { %v3710_v55 = vmul.f32 %v636_v34, %v3406_v10 }
 0x1e1   : > { %4671 = vst [vmem:[#allocation59_spill] sm:$0xff] %v3710_v55  ;;  %v1437_v55 = vmul.f32 %v3441_v24, %v3027_v3  ;;  %v461_v3 = vld [vmem:[%s4549_s5 + $0x60] sm:$0xff] }
 0x1e2   : > { %2372 = vmatmul.msk.f32.gmra.mxu3 %vm342_vm0, %v3429_v54 }
 0x1ea   : > { %2373 = vmatmul.msk.f32.gmra.mxu3 %vm342_vm0, %v3443_v62 }
 0x20d   : > { %v954_v59 = vpop.f32.mrf.mxu2 }
 0x20e   : > { %v3724_v8 = vadd.f32 %v954_v59, %v449_v57 }
 0x215   : > { %v957_v50 = vpop.f32.mrf.mxu2 }
 0x216   : > { %v3736_v36 = vadd.f32 %v957_v50, %v451_v33 }
 0x235   : > { %v995_v34 = vpop.f32.mrf.mxu3 }
 0x236   : > { %v3726_v1 = vadd.f32 %v995_v34, %v450_v47  ;;  %v960_v47 = vpop.f32.mrf.mxu2  ;;  %v454_v34 = vld [vmem:[%s4549_s5 + $0x28] sm:$0xff] }
 0x238   : > { %v1019_v0 = vmax.f32 %v3724_v8, %v3726_v1 }
 0x23a   : > { %1020 = vmax.xlane.f32.xlu1 %v1019_v0  ;;  %v453_v0 = vld [vmem:[%s4549_s5 + $0x20] sm:$0xff] }
 0x23b   : > { %v3748_v51 = vadd.f32 %v960_v47, %v453_v0 }
 0x23d   : > { %v998_v60 = vpop.f32.mrf.mxu3 }
 0x23e   : > { %v3738_v57 = vadd.f32 %v998_v60, %v452_v58  ;;  %v455_v60 = vld [vmem:[%s4549_s5 + $0x30] sm:$0xff]  ;;  %v963_v50 = vpop.f32.mrf.mxu2 }
 0x23f   : > { %v3760_v10 = vadd.f32 %v963_v50, %v455_v60  ;;  %v457_v60 = vld [vmem:[%s4549_s5 + $0x40] sm:$0xff]  ;;  %v1438_v50 = vmul.f32 %v3454_v29, %v3022_v2  ;;  %v1453_v2 = vmul.f32 %v3441_v24, %v3072_v13 }
 0x240   : > { %v1022_v59 = vmax.f32 %v3736_v36, %v3738_v57 }
 0x241   : > { %2374 = vmatpush.xpose.msk.msra.mxu0 %vm342_vm0, %v1438_v50 }
 0x242   : > { %1023 = vmax.xlane.f32.xlu2 %v1022_v59  ;;  %v456_v59 = vld [vmem:[%s4549_s5 + $0x38] sm:$0xff] }
 0x245   : > { %v1001_v38 = vpop.f32.mrf.mxu3  ;;  %2375 = vmatpush.xpose.msk.msra.mxu0 %vm342_vm0, %v1437_v55  ;;  %v1435_v55 = vmul.f32 %v3392_v40, %v3101_v17  ;;  %v460_v17 = vld [vmem:[%s4549_s5 + $0x58] sm:$0xff] }
 0x246   : > { %v3750_v33 = vadd.f32 %v1001_v38, %v454_v34  ;;  %v966_v34 = vpop.f32.mrf.mxu2 }
 0x247   : > { %v3786_v61 = vadd.f32 %v966_v34, %v457_v60  ;;  %v1436_v34 = vmul.f32 %v3414_v53, %v3032_v4  ;;  %v1451_v4 = vmul.f32 %v3392_v40, %v3096_v16 }
 0x248   : > { %v1025_v58 = vmax.f32 %v3748_v51, %v3750_v33 }
 0x249   : > { %2376 = vmatpush.xpose.msk.msra.mxu0 %vm342_vm0, %v1436_v34  ;;  %v1433_v34 = vmul.f32 %v3354_v6, %v3129_v21  ;;  %v4674_v21 = vld [vmem:[#allocation27_spill] sm:$0xff] }
 0x24a   : > { %1026 = vmax.xlane.f32.xlu0 %v1025_v58 }
 0x24d   : > { %v1004_v48 = vpop.f32.mrf.mxu3  ;;  %2377 = vmatpush.xpose.msk.msra.mxu0 %vm342_vm0, %v1435_v55  ;;  %v4673_v55 = vld [vmem:[#allocation8_spill] sm:$0xff] }
 0x24e   : > { %v3762_v47 = vadd.f32 %v1004_v48, %v456_v59  ;;  %v458_v48 = vld [vmem:[%s4549_s5 + $0x48] sm:$0xff]  ;;  %v1454_v59 = vmul.f32 %v3454_v29, %v3067_v12 }
 0x250   : > { %v1028_v38 = vmax.f32 %v3760_v10, %v3762_v47  ;;  %2398 = vmatpush.xpose.msk.msra.mxu1 %vm342_vm0, %v1454_v59  ;;  %v1434_v59 = vmul.f32 %v3372_v20, %v3108_v18 }
 0x252   : > { %1029 = vmax.xlane.f32.xlu2 %v1028_v38  ;;  %v969_v38 = vpop.f32.mrf.mxu2  ;;  %2378 = vmatpush.xpose.msk.msra.mxu0 %vm342_vm0, %v1434_v59  ;;  %v4675_v59 = vld [vmem:[#allocation9_spill] sm:$0xff] }
 0x253   : > { %685 = vrot.lane.b32.xlu1 %v3072_v13, %s2910_s19 }
 0x254   : > { %2399 = vmatpush.xpose.msk.msra.mxu1 %vm342_vm0, %v1453_v2  ;;  %v1450_v2 = vmul.f32 %v3372_v20, %v3122_v19 }
 0x255   : > { %v1007_v0 = vpop.f32.mrf.mxu3 }
 0x256   : > { %v3782_v43 = vadd.f32 %v1007_v0, %v458_v48  ;;  %2379 = vmatpush.xpose.msk.msra.mxu0 %vm342_vm0, %v1433_v34 }
 0x258   : > { %v1031_v56 = vmax.f32 %v3786_v61, %v3782_v43 }
 0x25a   : > { %v972_v13 = vpop.f32.mrf.mxu2 }
 0x25b   : > { %v3808_v60 = vadd.f32 %v972_v13, %v461_v3  ;;  %v3840_v3 = vpop.permute.xlu1 %1495 }
 0x25d   : > { %v1010_v58 = vpop.f32.mrf.mxu3 }
 0x25e   : > { %1499 = vrot.lane.b32.xlu0 %v3429_v54, %s2908_s20 }
 0x265   : > { %v1013_v0 = vpop.f32.mrf.mxu3 }
 0x26a   : > { %687 = vrot.lane.b32.xlu2 %v3067_v12, %s2910_s19  ;;  %v462_v12 = vld [vmem:[%s4549_s5 + $0x68] sm:$0xff] }
 0x26b   : > { %v3806_v48 = vadd.f32 %v1013_v0, %v462_v12  ;;  %v459_v12 = vld [vmem:[%s4549_s5 + $0x50] sm:$0xff]  ;;  %v3831_v0 = vadd.f32 %v1010_v58, %v460_v17  ;;  %v4672_v58 = vld [vmem:[#allocation32_spill] sm:$0xff]  ;;  %v1430_v17 = vmul.f32 %v3454_v29, %v3174_v28 }
 0x26c   : > { %v3834_v18 = vadd.f32 %v969_v38, %v459_v12  ;;  %v1432_v38 = vmul.f32 %v4672_v58, %v3143_v23  ;;  %v3860_v23 = vpop.permute.xlu1 %631  ;;  %v4676_v12 = vld [vmem:[#allocation10_spill] sm:$0xff]  ;;  %v4678_v28 = vld [vmem:[#allocation12_spill] sm:$0xff] }
 0x26d   : > { %v1037_v50 = vmax.f32 %v3808_v60, %v3806_v48  ;;  %v1446_v34 = vmul.f32 %v3454_v29, %v4676_v12 }
 0x26e   : > { %v1034_v13 = vmax.f32 %v3834_v18, %v3831_v0  ;;  %2380 = vmatpush.xpose.msk.msra.mxu0 %vm342_vm0, %v1432_v38  ;;  %v4679_v38 = vld [vmem:[#allocation13_spill] sm:$0xff] }
 0x27d   : > { %1032 = vmax.xlane.f32.xlu1 %v1031_v56  ;;  %v1452_v56 = vmul.f32 %v3414_v53, %v3078_v14 }
 0x27f   : > { %2400 = vmatpush.xpose.msk.msra.mxu1 %vm342_vm0, %v1452_v56  ;;  %v1449_v56 = vmul.f32 %v3354_v6, %v3135_v22 }
 0x283   : > { %2401 = vmatpush.xpose.msk.msra.mxu1 %vm342_vm0, %v1451_v4  ;;  %v1448_v4 = vmul.f32 %v4672_v58, %v4673_v55 }
 0x287   : > { %2402 = vmatpush.xpose.msk.msra.mxu1 %vm342_vm0, %v1450_v2  ;;  %v1447_v2 = vmul.f32 %v4674_v21, %v4675_v59 }
 0x288   : > { %1038 = vmax.xlane.f32.xlu0 %v1037_v50  ;;  %v1431_v50 = vmul.f32 %v4674_v21, %v3161_v25  ;;  %v4677_v25 = vld [vmem:[#allocation11_spill] sm:$0xff] }
 0x28a   : > { %2381 = vmatpush.xpose.msk.msra.mxu0 %vm342_vm0, %v1431_v50  ;;  %v1426_v50 = vmul.f32 %v3372_v20, %v3233_v37 }
 0x28b   : > { %2403 = vmatpush.xpose.msk.msra.mxu1 %vm342_vm0, %v1449_v56  ;;  %v1445_v56 = vmul.f32 %v3441_v24, %v4677_v25 }
 0x28e   : > { %2382 = vmatpush.xpose.msk.msra.mxu0 %vm342_vm0, %v1430_v17 }
 0x28f   : > { %2404 = vmatpush.xpose.msk.msra.mxu1 %vm342_vm0, %v1448_v4  ;;  %v1443_v4 = vmul.f32 %v3392_v40, %v4679_v38 }
 0x293   : > { %1035 = vmax.xlane.f32.xlu2 %v1034_v13  ;;  %2405 = vmatpush.xpose.msk.msra.mxu1 %vm342_vm0, %v1447_v2  ;;  %v1444_v13 = vmul.f32 %v3414_v53, %v4678_v28  ;;  %v4680_v2 = vld [vmem:[#allocation14_spill] sm:$0xff] }
 0x294   : > { %v1442_v17 = vmul.f32 %v3372_v20, %v4680_v2 }
 0x296   : > { %681 = vrot.lane.b32.xlu1 %v3096_v16, %s2910_s19  ;;  %v1429_v16 = vmul.f32 %v3441_v24, %v3188_v30  ;;  %v1427_v30 = vmul.f32 %v3392_v40, %v3219_v35  ;;  %v3904_v35 = vpop.permute.xlu2 %1497 }
 0x297   : > { %2406 = vmatpush.xpose.msk.msra.mxu1 %vm342_vm0, %v1446_v34  ;;  %v735_v34 = vmul.f32 %v3676_v41, %v3429_v54 }
 0x298   : > { %2383 = vmatpush.xpose.msk.msra.mxu0 %vm342_vm0, %v1429_v16 }
 0x29b   : > { %2407 = vmatpush.xpose.msk.msra.mxu1 %vm342_vm0, %v1445_v56  ;;  %v736_v56 = vmul.f32 %v3635_v63, %v3443_v62 }
 0x29c   : > { %679 = vrot.lane.b32.xlu0 %v3122_v19, %s2910_s19  ;;  %v1428_v19 = vmul.f32 %v3414_v53, %v3206_v32  ;;  %v3894_v32 = vpop.permute.xlu0 %629 }
 0x29e   : > { %677 = vrot.lane.b32.xlu1 %v3135_v22, %s2910_s19  ;;  %v3884_v22 = vpop.permute.xlu1 %627  ;;  %2384 = vmatpush.xpose.msk.msra.mxu0 %vm342_vm0, %v1428_v19  ;;  %v4681_v19 = vld [vmem:[#allocation15_spill] sm:$0xff] }
 0x29f   : > { %2408 = vmatpush.xpose.msk.msra.mxu1 %vm342_vm0, %v1444_v13  ;;  %v1441_v13 = vmul.f32 %v3354_v6, %v4681_v19 }
 0x2a2   : > { %2385 = vmatpush.xpose.msk.msra.mxu0 %vm342_vm0, %v1427_v30 }
 0x2a3   : > { %2409 = vmatpush.xpose.msk.msra.mxu1 %vm342_vm0, %v1443_v4  ;;  %v2518_v4 = vpack.i.bf16 %v735_v34, %v736_v56 }
 0x2a4   : > { %1501 = vrot.lane.b32.xlu0 %v3443_v62, %s2908_s20 }
 0x2a6   : > { %2386 = vmatpush.xpose.msk.msra.mxu0 %vm342_vm0, %v1426_v50 }
 0x2a7   : > { %2410 = vmatpush.xpose.msk.msra.mxu1 %vm342_vm0, %v1442_v17  ;;  %v1439_v17 = vmul.f32 %v4674_v21, %v3399_v27 }
 0x2ab   : > { %683 = vrot.lane.b32.xlu2 %v3078_v14, %s2910_s19  ;;  %2411 = vmatpush.xpose.msk.msra.mxu1 %vm342_vm0, %v1441_v13  ;;  %v1016_v13 = vpop.f32.mrf.mxu3 }
 0x2ac   : > { %673 = vrot.lane.b32.xlu0 %v4675_v59, %s2910_s19  ;;  %v1425_v59 = vmul.f32 %v3354_v6, %v3251_v39  ;;  %v3927_v39 = vpop.permute.xlu0 %625 }
 0x2ad   : > { %v1021_v16 = vpop.xlane.xlu1 %1020 }
 0x2ae   : > { %v1043_v14 = vsub.f32 %v3724_v8, %v1021_v16  ;;  %v1044_v37 = vsub.f32 %v3726_v1, %v1021_v16  ;;  %2387 = vmatpush.xpose.msk.msra.mxu0 %vm342_vm0, %v1425_v59  ;;  %v1424_v1 = vmul.f32 %v4672_v58, %v3264_v42  ;;  %v4682_v8 = vld [vmem:[#allocation16_spill] sm:$0xff]  ;;  %v1423_v16 = vmul.f32 %v4674_v21, %v3283_v44  ;;  %v464_v59 = vld [vmem:[%s4549_s5 + $0x78] sm:$0xff] }
 0x2af   : > { %v1440_v63 = vmul.f32 %v4672_v58, %v4682_v8 }
 0x2b0   : > { %v1059_v30 = vmul.f32 1.442695, %v1043_v14  ;;  %v1061_v41 = vmul.f32 1.442695, %v1044_v37 }
 0x2b1   : > { %2412 = vmatpush.xpose.msk.msra.mxu1 %vm342_vm0, %v1440_v63 }
 0x2b2   : > { %2679 = vpow2.f32 %v1059_v30  ;;  %2388 = vmatpush.xpose.msk.msra.mxu0 %vm342_vm0, %v1424_v1 }
 0x2b3   : > { %2681 = vpow2.f32 %v1061_v41  ;;  %2519 = vrot.lane.b32.xlu2 %v2518_v4, %s2910_s19 }
 0x2b4   : > { %669 = vrot.lane.b32.xlu0 %v4677_v25, %s2910_s19 }
 0x2b5   : > { %v1024_v50 = vpop.xlane.xlu2 %1023  ;;  %2413 = vmatpush.xpose.msk.msra.mxu1 %vm342_vm0, %v1439_v17 }
 0x2b6   : > { %v1045_v42 = vsub.f32 %v3736_v36, %v1024_v50  ;;  %v1046_v34 = vsub.f32 %v3738_v57, %v1024_v50  ;;  %2389 = vmatpush.xpose.msk.msra.mxu0 %vm342_vm0, %v1423_v16 }
 0x2b8   : > { %v3937_v14 = vpop.eup %2679  ;;  %v1063_v25 = vmul.f32 1.442695, %v1045_v42  ;;  %v1065_v37 = vmul.f32 1.442695, %v1046_v34 }
 0x2b9   : > { %v3939_v56 = vpop.eup %2681  ;;  %1107 = vmatmul.f32.vlgmr.msrb.gmra.mxu0 %v3937_v14 }
 0x2ba   : > { %2683 = vpow2.f32 %v1063_v25  ;;  %1148 = vmatmul.f32.vlgmr.msrb.gmra.mxu1 %v3939_v56 }
 0x2bb   : > { %2685 = vpow2.f32 %v1065_v37  ;;  %675 = vrot.lane.b32.xlu2 %v4673_v55, %s2910_s19  ;;  %v463_v55 = vld [vmem:[%s4549_s5 + $0x70] sm:$0xff] }
 0x2bc   : > { %665 = vrot.lane.b32.xlu0 %v4679_v38, %s2910_s19  ;;  %v975_v38 = vpop.f32.mrf.mxu2 }
 0x2bd   : > { %v1027_v44 = vpop.xlane.xlu0 %1026 }
 0x2be   : > { %v1047_v36 = vsub.f32 %v3748_v51, %v1027_v44  ;;  %v1048_v57 = vsub.f32 %v3750_v33, %v1027_v44  ;;  %v3962_v51 = vadd.f32 %v1016_v13, %v464_v59  ;;  %v3967_v33 = vadd.f32 %v975_v38, %v463_v55 }
 0x2bf   : > { %v4683_v13 = vpack.i.bf16 %v3686_v31, %v3683_v7  ;;  %v4686_v7 = vpack.i.bf16 %v3697_v15, %v3700_v49  ;;  %v4690_v15 = vld [vmem:[#allocation31_spill] sm:$0xff] }
 0x2c0   : > { %v3954_v30 = vpop.eup %2683  ;;  %v1067_v41 = vmul.f32 1.442695, %v1047_v36  ;;  %v1069_v4 = vmul.f32 1.442695, %v1048_v57  ;;  %v1040_v42 = vmax.f32 %v3967_v33, %v3962_v51  ;;  %v722_v49 = vmul.f32 %v3884_v22, %v4690_v15 }
 0x2c1   : > { %v3956_v1 = vpop.eup %2685  ;;  %1110 = vmatmul.f32.gmra.mxu0 %v3954_v30 }
 0x2c2   : > { %2687 = vpow2.f32 %v1067_v41  ;;  %1151 = vmatmul.f32.gmra.mxu1 %v3956_v1 }
 0x2c3   : > { %2689 = vpow2.f32 %v1069_v4  ;;  %671 = vrot.lane.b32.xlu2 %v4676_v12, %s2910_s19 }
 0x2c4   : > { %661 = vrot.lane.b32.xlu0 %v4681_v19, %s2910_s19 }
 0x2c5   : > { %v1030_v63 = vpop.xlane.xlu2 %1029 }
 0x2c6   : > { %v1049_v50 = vsub.f32 %v3760_v10, %v1030_v63  ;;  %v1050_v17 = vsub.f32 %v3762_v47, %v1030_v63  ;;  %v686_v10 = vpop.permute.xlu1 %685 }
 0x2c7   : > { %v751_v44 = vmul.f32 %v686_v10, %v3429_v54 }
 0x2c8   : > { %v3975_v34 = vpop.eup %2687  ;;  %v1071_v16 = vmul.f32 1.442695, %v1049_v50  ;;  %v1073_v25 = vmul.f32 1.442695, %v1050_v17  ;;  %1041 = vmax.xlane.f32.xlu1 %v1040_v42 }
 0x2c9   : > { %v3977_v37 = vpop.eup %2689  ;;  %1113 = vmatmul.f32.gmra.mxu0 %v3975_v34 }
 0x2ca   : > { %2691 = vpow2.f32 %v1071_v16  ;;  %1154 = vmatmul.f32.gmra.mxu1 %v3977_v37 }
 0x2cb   : > { %2693 = vpow2.f32 %v1073_v25  ;;  %667 = vrot.lane.b32.xlu2 %v4678_v28, %s2910_s19  ;;  %v724_v28 = vmul.f32 %v3860_v23, %v3368_v11  ;;  %v4685_v23 = vpack.i.bf16 %v3659_v45, %v3656_v26  ;;  %v4689_v45 = vld [vmem:[#allocation26_spill] sm:$0xff] }
 0x2cc   : > { %657 = vrot.lane.b32.xlu0 %v3399_v27, %s2910_s19  ;;  %v723_v27 = vmul.f32 %v3894_v32, %v3352_v5  ;;  %v721_v55 = vmul.f32 %v3927_v39, %v4689_v45 }
 0x2cd   : > { %v688_v47 = vpop.permute.xlu2 %687 }
 0x2ce   : > { %v752_v12 = vmul.f32 %v688_v47, %v3443_v62  ;;  %v2548_v59 = vpack.i.bf16 %v723_v27, %v724_v28  ;;  %v2553_v50 = vpack.i.bf16 %v721_v55, %v722_v49  ;;  %v4692_v27 = vld [vmem:[#allocation38_spill] sm:$0xff] }
 0x2d0   : > { %v3986_v19 = vpop.eup %2691  ;;  %v2558_v57 = vpack.i.bf16 %v751_v44, %v752_v12  ;;  %v4691_v44 = vld [vmem:[#allocation37_spill] sm:$0xff] }
 0x2d1   : > { %v3989_v36 = vpop.eup %2693  ;;  %1116 = vmatmul.f32.gmra.mxu0 %v3986_v19 }
 0x2d2   : > { %1157 = vmatmul.f32.gmra.mxu1 %v3989_v36 }
 0x2d3   : > { %663 = vrot.lane.b32.xlu2 %v4680_v2, %s2910_s19  ;;  %v4684_v2 = vpack.i.bf16 %v3649_v52, %v3646_v9 }
 0x2d4   : > { %2559 = vrot.lane.b32.xlu0 %v2558_v57, %s2910_s19 }
 0x2db   : > { %659 = vrot.lane.b32.xlu2 %v4682_v8, %s2910_s19 }
 0x2e1   : > { %2524 = vrot.lane.b32.xlu1 %v4683_v13, %s2910_s19 }
 0x2e3   : > { %2549 = vrot.lane.b32.xlu2 %v2548_v59, %s2910_s19 }
 0x2e9   : > { %2529 = vrot.lane.b32.xlu1 %v4684_v2, %s2910_s19 }
 0x2f0   : > { %v1033_v8 = vpop.xlane.xlu1 %1032 }
 0x2f1   : > { %v1051_v41 = vsub.f32 %v3786_v61, %v1033_v8  ;;  %v1052_v32 = vsub.f32 %v3782_v43, %v1033_v8  ;;  %2534 = vrot.lane.b32.xlu1 %v4685_v23, %s2910_s19  ;;  %v4027_v43 = vpop.permute.xlu0 %1499  ;;  %v4687_v61 = vld [vmem:[#allocation59_spill] sm:$0xff] }
 0x2f2   : > { %v4688_v26 = vpack.i.bf16 %v3707_v46, %v4687_v61 }
 0x2f3   : > { %v1075_v4 = vmul.f32 1.442695, %v1051_v41  ;;  %v1077_v31 = vmul.f32 1.442695, %v1052_v32 }
 0x2f5   : > { %2695 = vpow2.f32 %v1075_v4 }
 0x2f6   : > { %2697 = vpow2.f32 %v1077_v31 }
 0x2f9   : > { %2539 = vrot.lane.b32.xlu1 %v4686_v7, %s2910_s19 }
 0x2fb   : > { %v4021_v9 = vpop.eup %2695  ;;  %v1039_v38 = vpop.xlane.xlu0 %1038 }
 0x2fc   : > { %v4023_v52 = vpop.eup %2697  ;;  %1119 = vmatmul.f32.gmra.mxu0 %v4021_v9  ;;  %v1055_v46 = vsub.f32 %v3808_v60, %v1039_v38  ;;  %v1056_v39 = vsub.f32 %v3806_v48, %v1039_v38 }
 0x2fd   : > { %1160 = vmatmul.f32.gmra.mxu1 %v4023_v52 }
 0x2fe   : > { %v1083_v12 = vmul.f32 1.442695, %v1055_v46  ;;  %v1085_v28 = vmul.f32 1.442695, %v1056_v39 }
 0x301   : > { %2544 = vrot.lane.b32.xlu1 %v4688_v26, %s2910_s19 }
 0x306   : > { %v1036_v63 = vpop.xlane.xlu2 %1035 }
 0x307   : > { %v1053_v17 = vsub.f32 %v3834_v18, %v1036_v63  ;;  %v1054_v42 = vsub.f32 %v3831_v0, %v1036_v63 }
 0x308   : > { %v682_v16 = vpop.permute.xlu1 %681 }
 0x309   : > { %v1079_v25 = vmul.f32 1.442695, %v1053_v17  ;;  %v1081_v10 = vmul.f32 1.442695, %v1054_v42  ;;  %2554 = vrot.lane.b32.xlu1 %v2553_v50, %s2910_s19  ;;  %v749_v57 = vmul.f32 %v682_v16, %v4691_v44 }
 0x30b   : > { %2699 = vpow2.f32 %v1079_v25 }
 0x30c   : > { %2701 = vpow2.f32 %v1081_v10 }
 0x30d   : > { %2703 = vpow2.f32 %v1083_v12 }
 0x30e   : > { %v684_v47 = vpop.permute.xlu2 %683  ;;  %v680_v22 = vpop.permute.xlu0 %679  ;;  %2705 = vpow2.f32 %v1085_v28 }
 0x30f   : > { %v750_v18 = vmul.f32 %v684_v47, %v4692_v27  ;;  %v748_v2 = vmul.f32 %v680_v22, %v3368_v11  ;;  %v4693_v22 = vld [vmem:[#allocation18_spill] sm:$0xff] }
 0x310   : > { %v678_v0 = vpop.permute.xlu1 %677  ;;  %v1470_v12 = vmul.f32 %v4693_v22, %v3454_v29 }
 0x311   : > { %v4044_v59 = vpop.eup %2699  ;;  %v2563_v13 = vpack.i.bf16 %v749_v57, %v750_v18  ;;  %v747_v60 = vmul.f32 %v678_v0, %v3352_v5  ;;  %v4694_v57 = vld [vmem:[#allocation21_spill] sm:$0xff] }
 0x312   : > { %v4048_v8 = vpop.eup %2701  ;;  %1122 = vmatmul.f32.gmra.mxu0 %v4044_v59 }
 0x313   : > { %v2568_v48 = vpack.i.bf16 %v747_v60, %v748_v2  ;;  %1163 = vmatmul.f32.gmra.mxu1 %v4048_v8  ;;  %2564 = vrot.lane.b32.xlu2 %v2563_v13, %s2910_s19  ;;  %v4056_v4 = vpop.eup %2703 }
 0x314   : > { %v4058_v7 = vpop.eup %2705 }
 0x315   : > { %2569 = vrot.lane.b32.xlu1 %v2568_v48, %s2910_s19 }
 0x316   : > { %v2520_v41 = vpop.permute.xlu2 %2519  ;;  %v4054_v32 = vpop.permute.xlu0 %1501 }
 0x317   : > { %v2521_v23 = vunpack.i.l.bf16 %v2520_v41  ;;  %v2522_v31 = vunpack.i.h.bf16 %v2520_v41 }
 0x319   : > { %1301 = vmatpush.msrb.mxu2 %v2521_v23  ;;  %2437 = vmatpush.msrb.mxu3 %v2521_v23 }
 0x31a   : > { %1125 = vmatmul.f32.gmra.mxu0 %v4056_v4 }
 0x31b   : > { %1166 = vmatmul.f32.gmra.mxu1 %v4058_v7  ;;  %1302 = vmatpush.msrb.mxu2 %v2522_v31 }
 0x31c   : > { %2438 = vmatpush.msrb.mxu3 %v2522_v31  ;;  %v4696_v31 = vld [vmem:[#allocation20_spill] sm:$0xff] }
 0x31e   : > { %v676_v61 = vpop.permute.xlu2 %675  ;;  %v674_v26 = vpop.permute.xlu0 %673 }
 0x31f   : > { %v746_v55 = vmul.f32 %v676_v61, %v4690_v15  ;;  %v745_v49 = vmul.f32 %v674_v26, %v4689_v45 }
 0x321   : > { %v2573_v38 = vpack.i.bf16 %v745_v49, %v746_v55  ;;  %v4697_v49 = vld [vmem:[#allocation19_spill] sm:$0xff] }
 0x323   : > { %2574 = vrot.lane.b32.xlu0 %v2573_v38, %s2910_s19  ;;  %v1469_v38 = vmul.f32 %v4697_v49, %v3441_v24  ;;  %v4709_v49 = vld [vmem:[#allocation33_spill] sm:$0xff] }
 0x326   : > { %v672_v63 = vpop.permute.xlu2 %671  ;;  %v670_v50 = vpop.permute.xlu0 %669 }
 0x327   : > { %v744_v17 = vmul.f32 %v672_v63, %v3443_v62  ;;  %v743_v42 = vmul.f32 %v670_v50, %v3429_v54  ;;  %v1486_v62 = vmul.f32 %v4694_v57, %v3454_v29  ;;  %v4695_v29 = vld [vmem:[#allocation17_spill] sm:$0xff]  ;;  %v4698_v63 = vld [vmem:[#allocation22_spill] sm:$0xff]  ;;  %v4702_v57 = vld [vmem:[#allocation24_spill] sm:$0xff] }
 0x328   : > { %v1468_v23 = vmul.f32 %v4695_v29, %v3414_v53  ;;  %v4707_v29 = vld [vmem:[#allocation28_spill] sm:$0xff] }
 0x329   : > { %v2578_v16 = vpack.i.bf16 %v743_v42, %v744_v17 }
 0x32b   : > { %2579 = vrot.lane.b32.xlu2 %v2578_v16, %s2910_s19 }
 0x32e   : > { %v668_v25 = vpop.permute.xlu2 %667  ;;  %v666_v10 = vpop.permute.xlu0 %665 }
 0x32f   : > { %v742_v46 = vmul.f32 %v668_v25, %v4692_v27  ;;  %v741_v39 = vmul.f32 %v666_v10, %v4691_v44  ;;  %v2598_v44 = vpack.i.bf16 %v1486_v62, %v1470_v12  ;;  %v1483_v62 = vmul.f32 %v4702_v57, %v3392_v40 }
 0x331   : > { %v2583_v47 = vpack.i.bf16 %v741_v39, %v742_v46 }
 0x333   : > { %2584 = vrot.lane.b32.xlu1 %v2583_v47, %s2910_s19 }
 0x336   : > { %v4075_v18 = vpop.f32.mrf.mxu0  ;;  %v664_v54 = vpop.permute.xlu2 %663 }
 0x337   : > { %v4077_v28 = vpop.f32.mrf.mxu1  ;;  %v740_v0 = vmul.f32 %v664_v54, %v3368_v11  ;;  %v662_v13 = vpop.permute.xlu0 %661  ;;  %v1484_v11 = vmul.f32 %v4696_v31, %v3414_v53 }
 0x338   : > { %v739_v27 = vmul.f32 %v662_v13, %v3352_v5 }
 0x339   : > { %v2608_v53 = vpack.i.bf16 %v1484_v11, %v1468_v23  ;;  %v1481_v23 = vmul.f32 %v4707_v29, %v3354_v6  ;;  %v4708_v11 = vld [vmem:[#allocation55_spill] sm:$0xff] }
 0x33a   : > { %v2588_v2 = vpack.i.bf16 %v739_v27, %v740_v0 }
 0x33b   : > { %v1042_v60 = vpop.xlane.xlu1 %1041  ;;  %2599 = vrot.lane.b32.xlu1 %v2598_v44, %s2909_s14  ;;  %v4703_v44 = vld [vmem:[#allocation48_spill] sm:$0xff] }
 0x33c   : > { %v1057_v48 = vsub.f32 %v3967_v33, %v1042_v60  ;;  %v1058_v41 = vsub.f32 %v3962_v51, %v1042_v60  ;;  %2589 = vrot.lane.b32.xlu0 %v2588_v2, %s2910_s19  ;;  %v1485_v33 = vmul.f32 %v4698_v63, %v3441_v24  ;;  %v4699_v24 = vld [vmem:[#allocation23_spill] sm:$0xff]  ;;  %v4710_v63 = vld [vmem:[#allocation34_spill] sm:$0xff] }
 0x33d   : > { %v1466_v46 = vmul.f32 %v4699_v24, %v3372_v20  ;;  %v4704_v2 = vld [vmem:[#allocation47_spill] sm:$0xff] }
 0x33e   : > { %v1087_v61 = vmul.f32 1.442695, %v1057_v48  ;;  %v1089_v26 = vmul.f32 1.442695, %v1058_v41  ;;  %v1111_v5 = vpop.f32.mrf.mxu0  ;;  %v660_v55 = vpop.permute.xlu2 %659  ;;  %v2603_v10 = vpack.i.bf16 %v1485_v33, %v1469_v38  ;;  %v4705_v60 = vpack.i.bf16 %v4703_v44, %v4704_v2  ;;  %v4706_v48 = vld [vmem:[#allocation30_spill] sm:$0xff] }
 0x33f   : > { %v1152_v50 = vpop.f32.mrf.mxu1  ;;  %v738_v51 = vmul.f32 %v660_v55, %v4690_v15  ;;  %v658_v17 = vpop.permute.xlu0 %657  ;;  %v4700_v15 = vld [vmem:[#allocation29_spill] sm:$0xff]  ;;  %v1465_v41 = vmul.f32 %v4706_v48, %v3354_v6  ;;  %v1480_v38 = vmul.f32 %v4709_v49, %v4672_v58  ;;  %v1464_v33 = vmul.f32 %v4710_v63, %v4672_v58 }
 0x340   : > { %2707 = vpow2.f32 %v1087_v61  ;;  %v4094_v42 = vadd.f32 %v1152_v50, %v1111_v5  ;;  %v737_v16 = vmul.f32 %v658_v17, %v4689_v45  ;;  %v1482_v39 = vmul.f32 %v4700_v15, %v3372_v20  ;;  %v4701_v45 = vld [vmem:[#allocation25_spill] sm:$0xff]  ;;  %v4714_v15 = vld [vmem:[#allocation35_spill] sm:$0xff] }
 0x341   : > { %2709 = vpow2.f32 %v1089_v26  ;;  %v1467_v12 = vmul.f32 %v4701_v45, %v3392_v40  ;;  %v2623_v26 = vpack.i.bf16 %v1481_v23, %v1465_v41  ;;  %v2628_v17 = vpack.i.bf16 %v1480_v38, %v1464_v33  ;;  %v2775_v38 = vld [vmem:[%s4548_s4 + $0x78] sm:$0xff]  ;;  %v2776_v33 = vld [vmem:[%s4548_s4 + $0x70] sm:$0xff] }
 0x342   : > { %v2593_v25 = vpack.i.bf16 %v737_v16, %v738_v51  ;;  %v2618_v27 = vpack.i.bf16 %v1482_v39, %v1466_v46  ;;  %v4711_v51 = vld [vmem:[#allocation57_spill] sm:$0xff]  ;;  %v4713_v46 = vld [vmem:[#allocation36_spill] sm:$0xff] }
 0x343   : > { %2609 = vrot.lane.b32.xlu1 %v2608_v53, %s2909_s14  ;;  %v2613_v20 = vpack.i.bf16 %v1483_v62, %v1467_v12  ;;  %v4715_v39 = vpack.i.bf16 %v4713_v46, %v4714_v15  ;;  %v4716_v12 = vld [vmem:[#allocation58_spill] sm:$0xff]  ;;  %v4717_v62 = vld [vmem:[#allocation44_spill] sm:$0xff]  ;;  %v2783_v46 = vld [vmem:[%s4548_s4 + $0x38] sm:$0xff] }
 0x344   : > { %2604 = vrot.lane.b32.xlu0 %v2603_v10, %s2909_s14  ;;  %2594 = vrot.lane.b32.xlu2 %v2593_v25, %s2910_s19  ;;  %v4712_v10 = vld [vmem:[#allocation56_spill] sm:$0xff]  ;;  %v2784_v15 = vld [vmem:[%s4548_s4 + $0x30] sm:$0xff] }
 0x346   : > { %v4104_v47 = vpop.eup %2707  ;;  %v1114_v22 = vpop.f32.mrf.mxu0 }
 0x347   : > { %v4110_v54 = vpop.eup %2709  ;;  %v1155_v0 = vpop.f32.mrf.mxu1  ;;  %1128 = vmatmul.f32.gmra.mxu0 %v4104_v47 }
 0x348   : > { %v4113_v13 = vadd.f32 %v1155_v0, %v1114_v22  ;;  %1169 = vmatmul.f32.gmra.mxu1 %v4110_v54  ;;  %v4718_v0 = vld [vmem:[#allocation43_spill] sm:$0xff] }
 0x34b   : > { %2619 = vrot.lane.b32.xlu1 %v2618_v27, %s2909_s14  ;;  %v4719_v27 = vpack.i.bf16 %v4717_v62, %v4718_v0 }
 0x34c   : > { %2614 = vrot.lane.b32.xlu0 %v2613_v20, %s2909_s14  ;;  %2644 = vrot.lane.b32.xlu2 %v4705_v60, %s2909_s14 }
 0x34e   : > { %v1117_v40 = vpop.f32.mrf.mxu0 }
 0x34f   : > { %v1158_v31 = vpop.f32.mrf.mxu1  ;;  %2390 = vmatmul.msk.f32.vlgmr.msra.gmra.mxu0 %vm342_vm0, %v4708_v11 }
 0x350   : > { %v4128_v61 = vadd.f32 %v1158_v31, %v1117_v40  ;;  %2414 = vmatmul.msk.f32.vlgmr.msra.gmra.mxu1 %vm342_vm0, %v4708_v11  ;;  %v2550_v40 = vpop.permute.xlu2 %2549 }
 0x351   : > { %v2551_v41 = vunpack.i.l.bf16 %v2550_v40 }
 0x353   : > { %v2525_v5 = vpop.permute.xlu1 %2524 }
 0x354   : > { %2624 = vrot.lane.b32.xlu0 %v2623_v26, %s2909_s14  ;;  %v2526_v55 = vunpack.i.l.bf16 %v2525_v5  ;;  %v2527_v50 = vunpack.i.h.bf16 %v2525_v5  ;;  %v2560_v5 = vpop.permute.xlu0 %2559 }
 0x355   : > { %v2562_v63 = vunpack.i.h.bf16 %v2560_v5 }
 0x356   : > { %1303 = vmatpush.msrb.mxu2 %v2526_v55  ;;  %2439 = vmatpush.msrb.mxu3 %v2526_v55 }
 0x357   : > { %2391 = vmatmul.msk.f32.gmra.mxu0 %vm342_vm0, %v4711_v51 }
 0x358   : > { %2415 = vmatmul.msk.f32.gmra.mxu1 %vm342_vm0, %v4711_v51  ;;  %1304 = vmatpush.msrb.mxu2 %v2527_v50 }
 0x359   : > { %2440 = vmatpush.msrb.mxu3 %v2527_v50 }
 0x35b   : > { %v2530_v16 = vpop.permute.xlu1 %2529 }
 0x35c   : > { %2629 = vrot.lane.b32.xlu0 %v2628_v17, %s2909_s14  ;;  %v2531_v53 = vunpack.i.l.bf16 %v2530_v16  ;;  %v2532_v25 = vunpack.i.h.bf16 %v2530_v16  ;;  %v2778_v17 = vld [vmem:[%s4548_s4 + $0x60] sm:$0xff]  ;;  %v2779_v16 = vld [vmem:[%s4548_s4 + $0x58] sm:$0xff] }
 0x35e   : > { %1305 = vmatpush.msrb.mxu2 %v2531_v53  ;;  %2441 = vmatpush.msrb.mxu3 %v2531_v53 }
 0x35f   : > { %2392 = vmatmul.msk.f32.gmra.mxu0 %vm342_vm0, %v4712_v10 }
 0x360   : > { %2416 = vmatmul.msk.f32.gmra.mxu1 %vm342_vm0, %v4712_v10  ;;  %1306 = vmatpush.msrb.mxu2 %v2532_v25  ;;  %v2782_v10 = vld [vmem:[%s4548_s4 + $0x40] sm:$0xff] }
 0x361   : > { %2442 = vmatpush.msrb.mxu3 %v2532_v25  ;;  %v2781_v25 = vld [vmem:[%s4548_s4 + $0x48] sm:$0xff] }
 0x363   : > { %v2535_v24 = vpop.permute.xlu1 %2534 }
 0x364   : > { %2634 = vrot.lane.b32.xlu0 %v4715_v39, %s2909_s14  ;;  %v2536_v22 = vunpack.i.l.bf16 %v2535_v24  ;;  %v2537_v45 = vunpack.i.h.bf16 %v2535_v24 }
 0x366   : > { %1307 = vmatpush.msrb.mxu2 %v2536_v22  ;;  %2443 = vmatpush.msrb.mxu3 %v2536_v22 }
 0x367   : > { %2393 = vmatmul.msk.f32.gmra.mxu0 %vm342_vm0, %v4716_v12 }
 0x368   : > { %2417 = vmatmul.msk.f32.gmra.mxu1 %vm342_vm0, %v4716_v12  ;;  %1308 = vmatpush.msrb.mxu2 %v2537_v45 }
 0x369   : > { %2444 = vmatpush.msrb.mxu3 %v2537_v45  ;;  %v2785_v45 = vld [vmem:[%s4548_s4 + $0x28] sm:$0xff] }
 0x36b   : > { %v2540_v57 = vpop.permute.xlu1 %2539 }
 0x36c   : > { %2639 = vrot.lane.b32.xlu0 %v4719_v27, %s2909_s14  ;;  %v2541_v20 = vunpack.i.l.bf16 %v2540_v57  ;;  %v2542_v44 = vunpack.i.h.bf16 %v2540_v57  ;;  %v2786_v57 = vld [vmem:[%s4548_s4 + $0x20] sm:$0xff]  ;;  %v2787_v27 = vld [vmem:[%s4548_s4 + $0x18] sm:$0xff] }
 0x36d   : > { %v2565_v49 = vpop.permute.xlu2 %2564 }
 0x36e   : > { %1309 = vmatpush.msrb.mxu2 %v2541_v20  ;;  %2445 = vmatpush.msrb.mxu3 %v2541_v20 }
 0x36f   : > { %2394 = vmatmul.msk.f32.gmra.mxu0 %vm342_vm0, %v3840_v3 }
 0x370   : > { %2418 = vmatmul.msk.f32.gmra.mxu1 %vm342_vm0, %v3840_v3  ;;  %1310 = vmatpush.msrb.mxu2 %v2542_v44  ;;  %v2552_v3 = vunpack.i.h.bf16 %v2550_v40 }
 0x371   : > { %2446 = vmatpush.msrb.mxu3 %v2542_v44  ;;  %v2788_v44 = vld [vmem:[%s4548_s4 + $0x10] sm:$0xff] }
 0x373   : > { %v2545_v2 = vpop.permute.xlu1 %2544 }
 0x374   : > { %v2546_v60 = vunpack.i.l.bf16 %v2545_v2  ;;  %v2547_v48 = vunpack.i.h.bf16 %v2545_v2 }
 0x376   : > { %1311 = vmatpush.msrb.mxu2 %v2546_v60  ;;  %2447 = vmatpush.msrb.mxu3 %v2546_v60 }
 0x377   : > { %2395 = vmatmul.msk.f32.gmra.mxu0 %vm342_vm0, %v3904_v35 }
 0x378   : > { %2419 = vmatmul.msk.f32.gmra.mxu1 %vm342_vm0, %v3904_v35  ;;  %1312 = vmatpush.msrb.mxu2 %v2547_v48  ;;  %v2561_v35 = vunpack.i.l.bf16 %v2560_v5 }
 0x379   : > { %2448 = vmatpush.msrb.mxu3 %v2547_v48  ;;  %v1120_v29 = vpop.f32.mrf.mxu0 }
 0x37a   : > { %v1161_v23 = vpop.f32.mrf.mxu1  ;;  %1313 = vmatpush.msrb.mxu2 %v2551_v41 }
 0x37b   : > { %v4166_v31 = vadd.f32 %v1161_v23, %v1120_v29  ;;  %2449 = vmatpush.msrb.mxu3 %v2551_v41  ;;  %v2555_v11 = vpop.permute.xlu1 %2554 }
 0x37c   : > { %1314 = vmatpush.msrb.mxu2 %v2552_v3  ;;  %v2556_v26 = vunpack.i.l.bf16 %v2555_v11  ;;  %v2557_v55 = vunpack.i.h.bf16 %v2555_v11 }
 0x37d   : > { %2450 = vmatpush.msrb.mxu3 %v2552_v3 }
 0x37e   : > { %1315 = vmatpush.msrb.mxu2 %v2556_v26 }
 0x37f   : > { %2451 = vmatpush.msrb.mxu3 %v2556_v26  ;;  %2396 = vmatmul.msk.f32.gmra.mxu0 %vm342_vm0, %v4027_v43 }
 0x380   : > { %2420 = vmatmul.msk.f32.gmra.mxu1 %vm342_vm0, %v4027_v43  ;;  %1316 = vmatpush.msrb.mxu2 %v2557_v55  ;;  %v2566_v43 = vunpack.i.l.bf16 %v2565_v49 }
 0x381   : > { %2452 = vmatpush.msrb.mxu3 %v2557_v55  ;;  %1317 = vmatmul.f32.vlgmr.msrb.gmra.mxu2 %v3937_v14  ;;  %v2777_v14 = vld [vmem:[%s4548_s4 + $0x68] sm:$0xff] }
 0x382   : > { %1329 = vmatmul.f32.vlgmr.msrb.gmra.mxu3 %v4021_v9  ;;  %1769 = vmatpush.msra.mxu2 %v2775_v38  ;;  %v2567_v9 = vunpack.i.h.bf16 %v2565_v49 }
 0x383   : > { %1342 = vmatpush.msra.mxu3 %v2561_v35 }
 0x384   : > { %1770 = vmatpush.msra.mxu2 %v2776_v33 }
 0x385   : > { %1343 = vmatpush.msra.mxu3 %v2562_v63  ;;  %v2580_v12 = vpop.permute.xlu2 %2579 }
 0x386   : > { %1771 = vmatpush.msra.mxu2 %v2777_v14  ;;  %v2581_v20 = vunpack.i.l.bf16 %v2580_v12  ;;  %v2582_v2 = vunpack.i.h.bf16 %v2580_v12  ;;  %v2797_v12 = vld [vmem:[%s4548_s4 + $0xc8] sm:$0xff] }
 0x387   : > { %1344 = vmatpush.msra.mxu3 %v2566_v43  ;;  %v2570_v50 = vpop.permute.xlu1 %2569  ;;  %2397 = vmatmul.msk.f32.gmra.mxu0 %vm342_vm0, %v4054_v32 }
 0x388   : > { %v2571_v51 = vunpack.i.l.bf16 %v2570_v50  ;;  %2421 = vmatmul.msk.f32.gmra.mxu1 %vm342_vm0, %v4054_v32  ;;  %1772 = vmatpush.msra.mxu2 %v2778_v17  ;;  %v2572_v53 = vunpack.i.h.bf16 %v2570_v50  ;;  %v2780_v32 = vld [vmem:[%s4548_s4 + $0x50] sm:$0xff] }
 0x389   : > { %1345 = vmatpush.msra.mxu3 %v2567_v9  ;;  %1320 = vmatmul.f32.gmra.mxu2 %v3954_v30  ;;  %v2791_v9 = vld [vmem:[%s4548_s4 + $0xf8] sm:$0xff]  ;;  %v2792_v50 = vld [vmem:[%s4548_s4 + $0xf0] sm:$0xff] }
 0x38a   : > { %1332 = vmatmul.f32.gmra.mxu3 %v4044_v59  ;;  %1773 = vmatpush.msra.mxu2 %v2779_v16 }
 0x38b   : > { %1346 = vmatpush.msra.mxu3 %v2571_v51 }
 0x38c   : > { %1774 = vmatpush.msra.mxu2 %v2780_v32 }
 0x38d   : > { %1347 = vmatpush.msra.mxu3 %v2572_v53 }
 0x38e   : > { %1775 = vmatpush.msra.mxu2 %v2781_v25 }
 0x38f   : > { %v1123_v30 = vpop.f32.mrf.mxu0 }
 0x390   : > { %v1164_v59 = vpop.f32.mrf.mxu1  ;;  %1776 = vmatpush.msra.mxu2 %v2782_v10  ;;  %v2795_v10 = vld [vmem:[%s4548_s4 + $0xd8] sm:$0xff] }
 0x391   : > { %v4204_v24 = vadd.f32 %v1164_v59, %v1123_v30  ;;  %1323 = vmatmul.f32.gmra.mxu2 %v3975_v34  ;;  %v2794_v30 = vld [vmem:[%s4548_s4 + $0xe0] sm:$0xff] }
 0x392   : > { %1335 = vmatmul.f32.gmra.mxu3 %v4056_v4  ;;  %1777 = vmatpush.msra.mxu2 %v2783_v46 }
 0x394   : > { %1778 = vmatpush.msra.mxu2 %v2784_v15 }
 0x395   : > { %v2575_v39 = vpop.permute.xlu0 %2574 }
 0x396   : > { %v2576_v22 = vunpack.i.l.bf16 %v2575_v39  ;;  %1779 = vmatpush.msra.mxu2 %v2785_v45  ;;  %v2577_v62 = vunpack.i.h.bf16 %v2575_v39  ;;  %v2796_v39 = vld [vmem:[%s4548_s4 + $0xd0] sm:$0xff] }
 0x397   : > { %v1126_v34 = vpop.f32.mrf.mxu0 }
 0x398   : > { %v1167_v4 = vpop.f32.mrf.mxu1  ;;  %1348 = vmatpush.msra.mxu3 %v2576_v22  ;;  %1780 = vmatpush.msra.mxu2 %v2786_v57 }
 0x399   : > { %v4220_v0 = vadd.f32 %v1167_v4, %v1126_v34  ;;  %1326 = vmatmul.f32.gmra.mxu2 %v3986_v19  ;;  %v2789_v19 = vld [vmem:[%s4548_s4 + $0x8] sm:$0xff]  ;;  %v1407_v34 = vld [vmem:[#allocation2] sm:$0xff] }
 0x39a   : > { %1338 = vmatmul.f32.gmra.mxu3 %v4104_v47  ;;  %1781 = vmatpush.msra.mxu2 %v2787_v27  ;;  %v2790_v47 = vld [vmem:[%s4548_s4] sm:$0xff]  ;;  %v1408_v4 = vld [vmem:[#allocation2 + $0x8] sm:$0xff] }
 0x39b   : > { %1349 = vmatpush.msra.mxu3 %v2577_v62  ;;  %v2798_v62 = vld [vmem:[%s4548_s4 + $0xc0] sm:$0xff] }
 0x39c   : > { %1782 = vmatpush.msra.mxu2 %v2788_v44 }
 0x39d   : > { %1350 = vmatpush.msra.mxu3 %v2581_v20 }
 0x39e   : > { %1783 = vmatpush.msra.mxu2 %v2789_v19  ;;  %v2595_v26 = vpop.permute.xlu2 %2594 }
 0x39f   : > { %1351 = vmatpush.msra.mxu3 %v2582_v2  ;;  %v2596_v55 = vunpack.i.l.bf16 %v2595_v26  ;;  %v2597_v35 = vunpack.i.h.bf16 %v2595_v26  ;;  %v2799_v2 = vld [vmem:[%s4548_s4 + $0xb8] sm:$0xff] }
 0x3a0   : > { %1784 = vmatpush.msra.mxu2 %v2790_v47 }
 0x3a5   : > { %v2585_v60 = vpop.permute.xlu1 %2584 }
 0x3a6   : > { %v2586_v40 = vunpack.i.l.bf16 %v2585_v60  ;;  %v2587_v48 = vunpack.i.h.bf16 %v2585_v60 }
 0x3a8   : > { %1352 = vmatpush.msra.mxu3 %v2586_v40  ;;  %v1409_v40 = vld [vmem:[#allocation2 + $0x10] sm:$0xff] }
 0x3aa   : > { %1353 = vmatpush.msra.mxu3 %v2587_v48  ;;  %v2800_v48 = vld [vmem:[%s4548_s4 + $0xb0] sm:$0xff] }
 0x3ad   : > { %v2600_v41 = vpop.permute.xlu1 %2599 }
 0x3ae   : > { %v2602_v29 = vunpack.i.h.bf16 %v2600_v41  ;;  %v2601_v23 = vunpack.i.l.bf16 %v2600_v41  ;;  %v2590_v3 = vpop.permute.xlu0 %2589  ;;  %v1410_v41 = vld [vmem:[#allocation2 + $0x18] sm:$0xff] }
 0x3af   : > { %v2591_v11 = vunpack.i.l.bf16 %v2590_v3  ;;  %v2592_v5 = vunpack.i.h.bf16 %v2590_v3 }
 0x3b0   : > { %1979 = vmatpush.msrb.mxu0 %v2601_v23  ;;  %2020 = vmatpush.msrb.mxu1 %v2602_v29  ;;  %v2801_v23 = vld [vmem:[%s4548_s4 + $0xa8] sm:$0xff] }
 0x3b1   : > { %1354 = vmatpush.msra.mxu3 %v2591_v11 }
 0x3b3   : > { %1355 = vmatpush.msra.mxu3 %v2592_v5  ;;  %v2802_v5 = vld [vmem:[%s4548_s4 + $0xa0] sm:$0xff] }
 0x3b5   : > { %1356 = vmatpush.msra.mxu3 %v2596_v55  ;;  %v2610_v49 = vpop.permute.xlu1 %2609 }
 0x3b6   : > { %v2605_v38 = vpop.permute.xlu0 %2604  ;;  %v2612_v43 = vunpack.i.h.bf16 %v2610_v49  ;;  %v2611_v14 = vunpack.i.l.bf16 %v2610_v49 }
 0x3b7   : > { %v2607_v63 = vunpack.i.h.bf16 %v2605_v38  ;;  %v2606_v33 = vunpack.i.l.bf16 %v2605_v38  ;;  %1357 = vmatpush.msra.mxu3 %v2597_v35  ;;  %v1411_v38 = vld [vmem:[#allocation2 + $0x20] sm:$0xff] }
 0x3b8   : > { %1358 = vmatmul.f32.vlgmr.msra.gmra.mxu3 %v3939_v56  ;;  %v2793_v56 = vld [vmem:[%s4548_s4 + $0xe8] sm:$0xff] }
 0x3b9   : > { %1980 = vmatpush.msrb.mxu0 %v2606_v33  ;;  %2021 = vmatpush.msrb.mxu1 %v2607_v63  ;;  %v2803_v63 = vld [vmem:[%s4548_s4 + $0x98] sm:$0xff]  ;;  %v1412_v33 = vld [vmem:[#allocation2 + $0x28] sm:$0xff] }
 0x3ba   : > { %1810 = vmatpush.msrb.mxu3 %v2791_v9 }
 0x3bb   : > { %1981 = vmatpush.msrb.mxu0 %v2611_v14  ;;  %2022 = vmatpush.msrb.mxu1 %v2612_v43  ;;  %v2804_v14 = vld [vmem:[%s4548_s4 + $0x90] sm:$0xff] }
 0x3bc   : > { %1811 = vmatpush.msrb.mxu3 %v2792_v50  ;;  %v2645_v50 = vpop.permute.xlu2 %2644 }
 0x3bd   : > { %v2620_v51 = vpop.permute.xlu1 %2619 }
 0x3be   : > { %v2615_v17 = vpop.permute.xlu0 %2614  ;;  %1812 = vmatpush.msrb.mxu3 %v2793_v56  ;;  %v2622_v32 = vunpack.i.h.bf16 %v2620_v51  ;;  %v2621_v25 = vunpack.i.l.bf16 %v2620_v51  ;;  %v2805_v56 = vld [vmem:[%s4548_s4 + $0x88] sm:$0xff] }
 0x3bf   : > { %v2617_v16 = vunpack.i.h.bf16 %v2615_v17  ;;  %v2616_v53 = vunpack.i.l.bf16 %v2615_v17 }
 0x3c0   : > { %1361 = vmatmul.f32.gmra.mxu3 %v3956_v1 }
 0x3c1   : > { %1982 = vmatpush.msrb.mxu0 %v2616_v53  ;;  %2023 = vmatpush.msrb.mxu1 %v2617_v16 }
 0x3c2   : > { %1813 = vmatpush.msrb.mxu3 %v2794_v30  ;;  %v2646_v30 = vunpack.i.l.bf16 %v2645_v50 }
 0x3c3   : > { %1983 = vmatpush.msrb.mxu0 %v2621_v25  ;;  %2024 = vmatpush.msrb.mxu1 %v2622_v32  ;;  %v2647_v25 = vunpack.i.h.bf16 %v2645_v50 }
 0x3c4   : > { %v1129_v59 = vpop.f32.mrf.mxu0  ;;  %1814 = vmatpush.msrb.mxu3 %v2795_v10  ;;  %v4720_v10 = vld [vmem:[#allocation39_spill] sm:$0xff] }
 0x3c5   : > { %v1170_v46 = vpop.f32.mrf.mxu1 }
 0x3c6   : > { %v4253_v15 = vadd.f32 %v1170_v46, %v1129_v59  ;;  %v2625_v1 = vpop.permute.xlu0 %2624  ;;  %1815 = vmatpush.msrb.mxu3 %v2796_v39  ;;  %v2806_v59 = vld [vmem:[%s4548_s4 + $0x80] sm:$0xff]  ;;  %v4721_v46 = vld [vmem:[#allocation41_spill] sm:$0xff] }
 0x3c7   : > { %v2627_v22 = vunpack.i.h.bf16 %v2625_v1  ;;  %v2626_v45 = vunpack.i.l.bf16 %v2625_v1  ;;  %v4722_v1 = vpack.i.bf16 %v4720_v10, %v4721_v46  ;;  %v1416_v10 = vld [vmem:[#allocation2 + $0x48] sm:$0xff] }
 0x3c8   : > { %1364 = vmatmul.f32.gmra.mxu3 %v3977_v37 }
 0x3c9   : > { %1984 = vmatpush.msrb.mxu0 %v2626_v45  ;;  %2025 = vmatpush.msrb.mxu1 %v2627_v22  ;;  %v4724_v22 = vld [vmem:[#allocation50_spill] sm:$0xff] }
 0x3ca   : > { %1816 = vmatpush.msrb.mxu3 %v2797_v12  ;;  %v1456_v45 = vmul.f32 %v4724_v22, %v4672_v58  ;;  %v4726_v12 = vld [vmem:[#allocation42_spill] sm:$0xff] }
 0x3cc   : > { %v1632_v57 = vpop.f32.mrf.mxu0  ;;  %1817 = vmatpush.msrb.mxu3 %v2798_v62 }
 0x3cd   : > { %v4265_v27 = vadd.f32 %v1632_v57, %v1407_v34  ;;  %v1673_v20 = vpop.f32.mrf.mxu1  ;;  %v4725_v34 = vld [vmem:[#allocation40_spill] sm:$0xff]  ;;  %v4729_v57 = vld [vmem:[#allocation45_spill] sm:$0xff] }
 0x3ce   : > { %v4267_v44 = vadd.f32 %v1673_v20, %v1408_v4  ;;  %v2630_v37 = vpop.permute.xlu0 %2629  ;;  %1818 = vmatpush.msrb.mxu3 %v2799_v2  ;;  %v4727_v4 = vpack.i.bf16 %v4725_v34, %v4726_v12  ;;  %v4731_v20 = vld [vmem:[#allocation51_spill] sm:$0xff]  ;;  %v4732_v2 = vld [vmem:[#allocation49_spill] sm:$0xff] }
 0x3cf   : > { %v2632_v19 = vunpack.i.h.bf16 %v2630_v37  ;;  %v2631_v47 = vunpack.i.l.bf16 %v2630_v37  ;;  %v1457_v37 = vmul.f32 %v4731_v20, %v3354_v6  ;;  %v1150_v20 = vadd.f32 %v4077_v28, %v4075_v18 }
 0x3d0   : > { %1367 = vmatmul.f32.gmra.mxu3 %v3989_v36  ;;  %v1697_v60 = vmax.f32 %v4265_v27, %v4267_v44 }
 0x3d1   : > { %1985 = vmatpush.msrb.mxu0 %v2631_v47  ;;  %2026 = vmatpush.msrb.mxu1 %v2632_v19  ;;  %v1473_v19 = vmul.f32 %v4732_v2, %v3354_v6 }
 0x3d2   : > { %1698 = vmax.xlane.f32.xlu2 %v1697_v60  ;;  %1819 = vmatpush.msrb.mxu3 %v2800_v48 }
 0x3d4   : > { %v1635_v29 = vpop.f32.mrf.mxu0  ;;  %1820 = vmatpush.msrb.mxu3 %v2801_v23 }
 0x3d5   : > { %v4281_v36 = vadd.f32 %v1635_v29, %v1409_v40  ;;  %v1676_v3 = vpop.f32.mrf.mxu1  ;;  %v4734_v40 = vld [vmem:[#allocation54_spill] sm:$0xff] }
 0x3d6   : > { %v4283_v11 = vadd.f32 %v1676_v3, %v1410_v41  ;;  %v2635_v26 = vpop.permute.xlu0 %2634  ;;  %1821 = vmatpush.msrb.mxu3 %v2802_v5  ;;  %v1471_v48 = vmul.f32 %v4734_v40, %v4674_v21 }
 0x3d7   : > { %v2637_v55 = vunpack.i.h.bf16 %v2635_v26  ;;  %v2636_v35 = vunpack.i.l.bf16 %v2635_v26 }
 0x3d8   : > { %1370 = vmatmul.f32.gmra.mxu3 %v4023_v52  ;;  %v1700_v49 = vmax.f32 %v4281_v36, %v4283_v11 }
 0x3d9   : > { %1986 = vmatpush.msrb.mxu0 %v2636_v35  ;;  %2027 = vmatpush.msrb.mxu1 %v2637_v55  ;;  %v1413_v55 = vld [vmem:[#allocation2 + $0x30] sm:$0xff]  ;;  %v1414_v35 = vld [vmem:[#allocation2 + $0x38] sm:$0xff] }
 0x3da   : > { %1701 = vmax.xlane.f32.xlu1 %v1700_v49  ;;  %1822 = vmatpush.msrb.mxu3 %v2803_v63 }
 0x3dc   : > { %v1638_v43 = vpop.f32.mrf.mxu0  ;;  %1823 = vmatpush.msrb.mxu3 %v2804_v14 }
 0x3dd   : > { %v4297_v52 = vadd.f32 %v1638_v43, %v1411_v38  ;;  %v1679_v9 = vpop.f32.mrf.mxu1  ;;  %v1418_v43 = vld [vmem:[#allocation2 + $0x58] sm:$0xff] }
 0x3de   : > { %v4299_v51 = vadd.f32 %v1679_v9, %v1412_v33  ;;  %v2640_v17 = vpop.permute.xlu0 %2639  ;;  %1824 = vmatpush.msrb.mxu3 %v2805_v56  ;;  %v1417_v33 = vld [vmem:[#allocation2 + $0x50] sm:$0xff]  ;;  %v1419_v56 = vld [vmem:[#allocation2 + $0x60] sm:$0xff] }
 0x3df   : > { %v2642_v16 = vunpack.i.h.bf16 %v2640_v17  ;;  %v2641_v53 = vunpack.i.l.bf16 %v2640_v17 }
 0x3e0   : > { %v1703_v32 = vmax.f32 %v4297_v52, %v4299_v51  ;;  %1373 = vmatmul.f32.gmra.mxu3 %v4048_v8  ;;  %v4723_v8 = vld [vmem:[#allocation52_spill] sm:$0xff] }
 0x3e1   : > { %1987 = vmatpush.msrb.mxu0 %v2641_v53  ;;  %2028 = vmatpush.msrb.mxu1 %v2642_v16  ;;  %v1472_v39 = vmul.f32 %v4723_v8, %v4672_v58  ;;  %v2663_v58 = vpack.i.bf16 %v1473_v19, %v1457_v37  ;;  %v1420_v16 = vld [vmem:[#allocation2 + $0x68] sm:$0xff]  ;;  %v1383_v37 = vmax.f32 %v1150_v20, 1e-30 }
 0x3e2   : > { %1704 = vmax.xlane.f32.xlu0 %v1703_v32  ;;  %1825 = vmatpush.msrb.mxu3 %v2806_v59  ;;  %v1415_v59 = vld [vmem:[#allocation2 + $0x40] sm:$0xff] }
 0x3e3   : > { %1988 = vmatpush.msrb.mxu0 %v2646_v30  ;;  %2029 = vmatpush.msrb.mxu1 %v2647_v25  ;;  %v2668_v47 = vpack.i.bf16 %v1472_v39, %v1456_v45  ;;  %v1422_v39 = vld [vmem:[#allocation2 + $0x78] sm:$0xff]  ;;  %2711 = vrcp.f32 %v1383_v37 }
 0x3e4   : > { %v1641_v41 = vpop.f32.mrf.mxu0 }
 0x3e5   : > { %v1682_v29 = vpop.f32.mrf.mxu1  ;;  %v4341_v38 = vadd.f32 %v1641_v41, %v1413_v55  ;;  %v1385_v41 = vmax.f32 %v4113_v13, 1e-30 }
 0x3e6   : > { %v4343_v63 = vadd.f32 %v1682_v29, %v1414_v35  ;;  %v1386_v35 = vmax.f32 %v4128_v61, 1e-30  ;;  %v1387_v61 = vmax.f32 %v4166_v31, 1e-30 }
 0x3e8   : > { %1376 = vmatmul.f32.gmra.mxu3 %v4058_v7  ;;  %v4728_v7 = vld [vmem:[#allocation46_spill] sm:$0xff]  ;;  %v1706_v17 = vmax.f32 %v4341_v38, %v4343_v63 }
 0x3e9   : > { %v4730_v62 = vpack.i.bf16 %v4728_v7, %v4729_v57 }
 0x3ea   : > { %2654 = vrot.lane.b32.xlu2 %v4722_v1, %s2909_s14  ;;  %v1421_v1 = vld [vmem:[#allocation2 + $0x70] sm:$0xff] }
 0x3ec   : > { %v1644_v3 = vpop.f32.mrf.mxu0 }
 0x3ed   : > { %v1685_v26 = vpop.f32.mrf.mxu1  ;;  %v4361_v45 = vadd.f32 %v1644_v3, %v1415_v59 }
 0x3ee   : > { %v4363_v34 = vadd.f32 %v1685_v26, %v1416_v10 }
 0x3f0   : > { %1379 = vmatmul.f32.gmra.mxu3 %v4110_v54  ;;  %v4733_v54 = vld [vmem:[#allocation53_spill] sm:$0xff]  ;;  %v1709_v7 = vmax.f32 %v4361_v45, %v4363_v34 }
 0x3f1   : > { %v1455_v60 = vmul.f32 %v4733_v54, %v4674_v21 }
 0x3f2   : > { %2659 = vrot.lane.b32.xlu2 %v4727_v4, %s2909_s14 }
 0x3f3   : > { %2649 = vrot.lane.b32.xlu1 %v4730_v62, %s2909_s14  ;;  %v2673_v23 = vpack.i.bf16 %v1471_v48, %v1455_v60  ;;  %v2712_v60 = vpop.eup %2711 }
 0x3f4   : > { %v1647_v6 = vpop.f32.mrf.mxu0 }
 0x3f5   : > { %v1688_v5 = vpop.f32.mrf.mxu1  ;;  %v4345_v21 = vadd.f32 %v1647_v6, %v1417_v33 }
 0x3f6   : > { %2669 = vrot.lane.b32.xlu0 %v2668_v47, %s2909_s14  ;;  %v4347_v14 = vadd.f32 %v1688_v5, %v1418_v43  ;;  %v1384_v47 = vmax.f32 %v4094_v42, 1e-30 }
 0x3f8   : > { %v1712_v53 = vmax.f32 %v4345_v21, %v4347_v14  ;;  %2713 = vrcp.f32 %v1384_v47 }
 0x3f9   : > { %2715 = vrcp.f32 %v1385_v41 }
 0x3fa   : > { %2664 = vrot.lane.b32.xlu2 %v2663_v58, %s2909_s14 }
 0x3fc   : > { %v1650_v9 = vpop.f32.mrf.mxu0 }
 0x3fd   : > { %v1691_v50 = vpop.f32.mrf.mxu1  ;;  %v4353_v32 = vadd.f32 %v1650_v9, %v1419_v56 }
 0x3fe   : > { %v4355_v25 = vadd.f32 %v1691_v50, %v1420_v16  ;;  %v2714_v3 = vpop.eup %2713 }
 0x3ff   : > { %v2716_v43 = vpop.eup %2715 }
 0x400   : > { %v1715_v46 = vmax.f32 %v4353_v32, %v4355_v25 }
 0x402   : > { %2674 = vrot.lane.b32.xlu2 %v2673_v23, %s2909_s14 }
 0x404   : > { %v1653_v8 = vpop.f32.mrf.mxu0  ;;  %v1318_v19 = vpop.f32.mrf.mxu2 }
 0x405   : > { %v4339_v49 = vpop.f32.mrf.mxu3  ;;  %v1694_v22 = vpop.f32.mrf.mxu1  ;;  %v4365_v12 = vadd.f32 %v1653_v8, %v1421_v1 }
 0x406   : > { %v4367_v4 = vadd.f32 %v1694_v22, %v1422_v39 }
 0x408   : > { %v1718_v62 = vmax.f32 %v4365_v12, %v4367_v4 }
 0x40c   : > { %v1321_v48 = vpop.f32.mrf.mxu2 }
 0x40d   : > { %v4357_v30 = vpop.f32.mrf.mxu3 }
 0x414   : > { %v1324_v55 = vpop.f32.mrf.mxu2 }
 0x415   : > { %v4371_v57 = vpop.f32.mrf.mxu3 }
 0x41c   : > { %v1327_v10 = vpop.f32.mrf.mxu2 }
 0x41d   : > { %1707 = vmax.xlane.f32.xlu1 %v1706_v17  ;;  %v4377_v2 = vpop.f32.mrf.mxu3 }
 0x420   : > { %1713 = vmax.xlane.f32.xlu0 %v1712_v53 }
 0x425   : > { %1716 = vmax.xlane.f32.xlu1 %v1715_v46 }
 0x42b   : > { %1710 = vmax.xlane.f32.xlu2 %v1709_v7 }
 0x42d   : > { %1719 = vmax.xlane.f32.xlu1 %v1718_v62 }
 0x43b   : > { %v1359_v58 = vpop.f32.mrf.mxu3 }
 0x43c   : > { %v1360_v54 = vadd.f32 %v1359_v58, %v1318_v19  ;;  %v1388_v19 = vmax.f32 %v4204_v24, 1e-30 }
 0x43e   : > { %v4380_v40 = vmul.f32 %v2712_v60, %v1360_v54 }
 0x443   : > { %v1362_v29 = vpop.f32.mrf.mxu3 }
 0x444   : > { %v1363_v23 = vadd.f32 %v1362_v29, %v1321_v48  ;;  %v1389_v48 = vmax.f32 %v4220_v0, 1e-30  ;;  %v1390_v0 = vmax.f32 %v4253_v15, 1e-30 }
 0x445   : > { %v1699_v18 = vpop.xlane.xlu2 %1698 }
 0x446   : > { %v4383_v28 = vmul.f32 %v2714_v3, %v1363_v23  ;;  %v1721_v26 = vsub.f32 %v4265_v27, %v1699_v18  ;;  %v1722_v6 = vsub.f32 %v4267_v44, %v1699_v18 }
 0x448   : > { %v1737_v42 = vmul.f32 1.442695, %v1721_v26  ;;  %v1739_v5 = vmul.f32 1.442695, %v1722_v6 }
 0x44a   : > { %2717 = vpow2.f32 %v1737_v42 }
 0x44b   : > { %2719 = vpow2.f32 %v1739_v5  ;;  %v1365_v33 = vpop.f32.mrf.mxu3 }
 0x44c   : > { %v1366_v13 = vadd.f32 %v1365_v33, %v1324_v55  ;;  %2721 = vrcp.f32 %v1386_v35 }
 0x44d   : > { %v1702_v9 = vpop.xlane.xlu1 %1701  ;;  %v2655_v44 = vpop.permute.xlu2 %2654 }
 0x44e   : > { %v4388_v50 = vmul.f32 %v2716_v43, %v1366_v13  ;;  %v1723_v17 = vsub.f32 %v4281_v36, %v1702_v9  ;;  %v1724_v27 = vsub.f32 %v4283_v11, %v1702_v9  ;;  %v2657_v6 = vunpack.i.h.bf16 %v2655_v44 }
 0x44f   : > { %v2656_v42 = vunpack.i.l.bf16 %v2655_v44 }
 0x450   : > { %v4392_v56 = vpop.eup %2717  ;;  %v1741_v16 = vmul.f32 1.442695, %v1723_v17  ;;  %v1743_v53 = vmul.f32 1.442695, %v1724_v27 }
 0x451   : > { %v4394_v59 = vpop.eup %2719  ;;  %1785 = vmatmul.f32.vlgmr.msra.gmra.mxu2 %v4392_v56 }
 0x452   : > { %2723 = vpow2.f32 %v1741_v16  ;;  %1826 = vmatmul.f32.vlgmr.msrb.gmra.mxu3 %v4394_v59  ;;  %v2722_v11 = vpop.eup %2721 }
 0x453   : > { %2725 = vpow2.f32 %v1743_v53  ;;  %v1368_v36 = vpop.f32.mrf.mxu3 }
 0x454   : > { %v1369_v46 = vadd.f32 %v1368_v36, %v1327_v10  ;;  %2727 = vrcp.f32 %v1387_v61 }
 0x455   : > { %v1705_v1 = vpop.xlane.xlu0 %1704  ;;  %v2660_v37 = vpop.permute.xlu2 %2659 }
 0x456   : > { %v4399_v8 = vmul.f32 %v2722_v11, %v1369_v46  ;;  %v1725_v39 = vsub.f32 %v4297_v52, %v1705_v1  ;;  %v1726_v22 = vsub.f32 %v4299_v51, %v1705_v1  ;;  %v2662_v5 = vunpack.i.h.bf16 %v2660_v37 }
 0x457   : > { %v2661_v55 = vunpack.i.l.bf16 %v2660_v37 }
 0x458   : > { %v4403_v7 = vpop.eup %2723  ;;  %v1745_v62 = vmul.f32 1.442695, %v1725_v39  ;;  %v1747_v31 = vmul.f32 1.442695, %v1726_v22 }
 0x459   : > { %v4405_v20 = vpop.eup %2725  ;;  %1788 = vmatmul.f32.gmra.mxu2 %v4403_v7 }
 0x45a   : > { %2729 = vpow2.f32 %v1745_v62  ;;  %1829 = vmatmul.f32.gmra.mxu3 %v4405_v20  ;;  %v2728_v58 = vpop.eup %2727 }
 0x45b   : > { %2731 = vpow2.f32 %v1747_v31  ;;  %v1371_v47 = vpop.f32.mrf.mxu3 }
 0x45c   : > { %v1372_v52 = vadd.f32 %v1371_v47, %v4339_v49  ;;  %2733 = vrcp.f32 %v1388_v19 }
 0x45d   : > { %v2665_v41 = vpop.permute.xlu2 %2664  ;;  %2735 = vrcp.f32 %v1389_v48 }
 0x45e   : > { %v4411_v51 = vmul.f32 %v2728_v58, %v1372_v52  ;;  %v2666_v13 = vunpack.i.l.bf16 %v2665_v41  ;;  %2737 = vrcp.f32 %v1390_v0 }
 0x460   : > { %v2730_v54 = vpop.eup %2729 }
 0x461   : > { %v2732_v60 = vpop.eup %2731  ;;  %1791 = vmatmul.f32.gmra.mxu2 %v2730_v54 }
 0x462   : > { %1832 = vmatmul.f32.gmra.mxu3 %v2732_v60  ;;  %v2734_v3 = vpop.eup %2733 }
 0x463   : > { %v1374_v29 = vpop.f32.mrf.mxu3  ;;  %v2736_v9 = vpop.eup %2735 }
 0x464   : > { %v1375_v23 = vadd.f32 %v1374_v29, %v4357_v30  ;;  %v2667_v30 = vunpack.i.h.bf16 %v2665_v41  ;;  %v2738_v10 = vpop.eup %2737 }
 0x465   : > { %v2650_v24 = vpop.permute.xlu1 %2649  ;;  %v2675_v17 = vpop.permute.xlu2 %2674 }
 0x466   : > { %v4415_v18 = vmul.f32 %v2734_v3, %v1375_v23  ;;  %v2652_v26 = vunpack.i.h.bf16 %v2650_v24  ;;  %v2651_v49 = vunpack.i.l.bf16 %v2650_v24  ;;  %v2677_v53 = vunpack.i.h.bf16 %v2675_v17 }
 0x467   : > { %v2676_v61 = vunpack.i.l.bf16 %v2675_v17 }
 0x468   : > { %1989 = vmatpush.msrb.mxu0 %v2651_v49  ;;  %2030 = vmatpush.msrb.mxu1 %v2652_v26  ;;  %v2670_v35 = vpop.permute.xlu0 %2669 }
 0x469   : > { %v2672_v27 = vunpack.i.h.bf16 %v2670_v35  ;;  %v2671_v44 = vunpack.i.l.bf16 %v2670_v35 }
 0x46a   : > { %1990 = vmatpush.msrb.mxu0 %v2656_v42  ;;  %2031 = vmatpush.msrb.mxu1 %v2657_v6 }
 0x46b   : > { %v1377_v33 = vpop.f32.mrf.mxu3 }
 0x46c   : > { %v1378_v43 = vadd.f32 %v1377_v33, %v4371_v57  ;;  %1991 = vmatpush.msrb.mxu0 %v2661_v55  ;;  %2032 = vmatpush.msrb.mxu1 %v2662_v5 }
 0x46e   : > { %v4419_v16 = vmul.f32 %v2736_v9, %v1378_v43  ;;  %1992 = vmatpush.msrb.mxu0 %v2666_v13  ;;  %2033 = vmatpush.msrb.mxu1 %v2667_v30 }
 0x470   : > { %1993 = vmatpush.msrb.mxu0 %v2671_v44  ;;  %2034 = vmatpush.msrb.mxu1 %v2672_v27 }
 0x472   : > { %1994 = vmatpush.msrb.mxu0 %v2676_v61  ;;  %2035 = vmatpush.msrb.mxu1 %v2677_v53 }
 0x473   : > { %v1380_v15 = vpop.f32.mrf.mxu3  ;;  %1995 = vmatmul.f32.vlgmr.msrb.gmra.mxu0 %v4392_v56  ;;  %2036 = vmatmul.f32.vlgmr.msrb.gmra.mxu1 %v4394_v59 }
 0x474   : > { %v1381_v57 = vadd.f32 %v1380_v15, %v4377_v2 }
 0x476   : > { %v4424_v36 = vmul.f32 %v2738_v10, %v1381_v57 }
 0x47b   : > { %1998 = vmatmul.f32.gmra.mxu0 %v4403_v7  ;;  %2039 = vmatmul.f32.gmra.mxu1 %v4405_v20 }
 0x483   : > { %2001 = vmatmul.f32.gmra.mxu0 %v2730_v54  ;;  %2042 = vmatmul.f32.gmra.mxu1 %v2732_v60 }
 0x490   : > { %v1708_v46 = vpop.xlane.xlu1 %1707 }
 0x491   : > { %v1727_v11 = vsub.f32 %v4341_v38, %v1708_v46  ;;  %v1728_v1 = vsub.f32 %v4343_v63, %v1708_v46 }
 0x493   : > { %v1749_v39 = vmul.f32 1.442695, %v1727_v11  ;;  %v1751_v56 = vmul.f32 1.442695, %v1728_v1  ;;  %v1714_v20 = vpop.xlane.xlu0 %1713 }
 0x494   : > { %v1731_v63 = vsub.f32 %v4345_v21, %v1714_v20  ;;  %v1732_v31 = vsub.f32 %v4347_v14, %v1714_v20 }
 0x495   : > { %2739 = vpow2.f32 %v1749_v39 }
 0x496   : > { %2741 = vpow2.f32 %v1751_v56  ;;  %v1757_v47 = vmul.f32 1.442695, %v1731_v63  ;;  %v1759_v52 = vmul.f32 1.442695, %v1732_v31  ;;  %v2132_v63 = vld [vmem:[%s4546_s2 + $0x38] sm:$0xff] }
 0x497   : > { %2453 = vmatpush.msrb.mxu2 %v2132_v63  ;;  %2170 = vmatpush.msra.mxu0 %v2132_v63 }
 0x498   : > { %v1717_v19 = vpop.xlane.xlu1 %1716 }
 0x49b   : > { %v2740_v59 = vpop.eup %2739 }
 0x49c   : > { %v2742_v2 = vpop.eup %2741  ;;  %1794 = vmatmul.f32.gmra.mxu2 %v2740_v59  ;;  %2004 = vmatmul.f32.gmra.mxu0 %v2740_v59 }
 0x49d   : > { %1835 = vmatmul.f32.gmra.mxu3 %v2742_v2  ;;  %2045 = vmatmul.f32.gmra.mxu1 %v2742_v2 }
 0x49e   : > { %v1711_v22 = vpop.xlane.xlu2 %1710 }
 0x49f   : > { %v1729_v7 = vsub.f32 %v4361_v45, %v1711_v22  ;;  %v1730_v62 = vsub.f32 %v4363_v34, %v1711_v22  ;;  %v1733_v45 = vsub.f32 %v4353_v32, %v1717_v19  ;;  %v1734_v34 = vsub.f32 %v4355_v25, %v1717_v19 }
 0x4a0   : > { %v1720_v48 = vpop.xlane.xlu1 %1719 }
 0x4a1   : > { %v1753_v37 = vmul.f32 1.442695, %v1729_v7  ;;  %v1755_v38 = vmul.f32 1.442695, %v1730_v62  ;;  %v1761_v21 = vmul.f32 1.442695, %v1733_v45  ;;  %v1735_v29 = vsub.f32 %v4365_v12, %v1720_v48 }
 0x4a2   : > { %v1763_v60 = vmul.f32 1.442695, %v1734_v34  ;;  %v1736_v32 = vsub.f32 %v4367_v4, %v1720_v48  ;;  %v2129_v45 = vld [vmem:[%s4546_s2 + $0x20] sm:$0xff]  ;;  %v2128_v48 = vld [vmem:[%s4546_s2 + $0x18] sm:$0xff] }
 0x4a3   : > { %2743 = vpow2.f32 %v1753_v37  ;;  %v1765_v23 = vmul.f32 1.442695, %v1735_v29  ;;  %v2126_v29 = vld [vmem:[%s4546_s2 + $0x8] sm:$0xff] }
 0x4a4   : > { %2745 = vpow2.f32 %v1755_v38  ;;  %v1767_v3 = vmul.f32 1.442695, %v1736_v32 }
 0x4a5   : > { %2747 = vpow2.f32 %v1757_v47  ;;  %v2131_v47 = vld [vmem:[%s4546_s2 + $0x30] sm:$0xff] }
 0x4a6   : > { %2749 = vpow2.f32 %v1759_v52  ;;  %v2130_v52 = vld [vmem:[%s4546_s2 + $0x28] sm:$0xff]  ;;  %2454 = vmatpush.msrb.mxu2 %v2131_v47  ;;  %2171 = vmatpush.msra.mxu0 %v2131_v47 }
 0x4a7   : > { %2751 = vpow2.f32 %v1761_v21 }
 0x4a8   : > { %2753 = vpow2.f32 %v1763_v60  ;;  %2455 = vmatpush.msrb.mxu2 %v2130_v52  ;;  %2172 = vmatpush.msra.mxu0 %v2130_v52 }
 0x4a9   : > { %v2744_v58 = vpop.eup %2743  ;;  %2755 = vpow2.f32 %v1765_v23 }
 0x4aa   : > { %v2746_v54 = vpop.eup %2745  ;;  %1797 = vmatmul.f32.gmra.mxu2 %v2744_v58  ;;  %2007 = vmatmul.f32.gmra.mxu0 %v2744_v58  ;;  %2757 = vpow2.f32 %v1767_v3 }
 0x4ab   : > { %1838 = vmatmul.f32.gmra.mxu3 %v2746_v54  ;;  %2048 = vmatmul.f32.gmra.mxu1 %v2746_v54  ;;  %v2748_v14 = vpop.eup %2747 }
 0x4ac   : > { %v2750_v41 = vpop.eup %2749  ;;  %2456 = vmatpush.msrb.mxu2 %v2129_v45  ;;  %2173 = vmatpush.msra.mxu0 %v2129_v45 }
 0x4ad   : > { %v2752_v24 = vpop.eup %2751 }
 0x4ae   : > { %v2754_v26 = vpop.eup %2753  ;;  %2457 = vmatpush.msrb.mxu2 %v2128_v48  ;;  %2174 = vmatpush.msra.mxu0 %v2128_v48 }
 0x4af   : > { %v2756_v25 = vpop.eup %2755 }
 0x4b0   : > { %v2758_v49 = vpop.eup %2757 }
 0x4b2   : > { %1800 = vmatmul.f32.gmra.mxu2 %v2748_v14  ;;  %2010 = vmatmul.f32.gmra.mxu0 %v2748_v14 }
 0x4b3   : > { %1841 = vmatmul.f32.gmra.mxu3 %v2750_v41  ;;  %2051 = vmatmul.f32.gmra.mxu1 %v2750_v41  ;;  %v2127_v41 = vld [vmem:[%s4546_s2 + $0x10] sm:$0xff] }
 0x4b4   : > { %2458 = vmatpush.msrb.mxu2 %v2127_v41  ;;  %2175 = vmatpush.msra.mxu0 %v2127_v41 }
 0x4b6   : > { %2459 = vmatpush.msrb.mxu2 %v2126_v29  ;;  %2176 = vmatpush.msra.mxu0 %v2126_v29 }
 0x4ba   : > { %1803 = vmatmul.f32.gmra.mxu2 %v2752_v24  ;;  %2013 = vmatmul.f32.gmra.mxu0 %v2752_v24 }
 0x4bb   : > { %1844 = vmatmul.f32.gmra.mxu3 %v2754_v26  ;;  %2054 = vmatmul.f32.gmra.mxu1 %v2754_v26  ;;  %v2125_v26 = vld [vmem:[%s4546_s2] sm:$0xff] }
 0x4bc   : > { %2460 = vmatpush.msrb.mxu2 %v2125_v26  ;;  %2177 = vmatpush.msra.mxu0 %v2125_v26 }
 0x4c2   : > { %1806 = vmatmul.f32.gmra.mxu2 %v2756_v25  ;;  %2016 = vmatmul.f32.gmra.mxu0 %v2756_v25 }
 0x4c3   : > { %1847 = vmatmul.f32.gmra.mxu3 %v2758_v49  ;;  %2057 = vmatmul.f32.gmra.mxu1 %v2758_v49 }
 0x4d4   : > { %v1786_v12 = vpop.f32.mrf.mxu2 }
 0x4d5   : > { %v1827_v6 = vpop.f32.mrf.mxu3 }
 0x4d6   : > { %v1828_v42 = vadd.f32 %v1827_v6, %v1786_v12 }
 0x4d8   : > { %v2061_v55 = vmax.f32 %v1828_v42, 1e-30 }
 0x4da   : > { %2759 = vrcp.f32 %v2061_v55 }
 0x4dc   : > { %v1789_v4 = vpop.f32.mrf.mxu2 }
 0x4dd   : > { %v1830_v5 = vpop.f32.mrf.mxu3 }
 0x4de   : > { %v1831_v0 = vadd.f32 %v1830_v5, %v1789_v4 }
 0x4e0   : > { %v2062_v35 = vmax.f32 %v1831_v0, 1e-30  ;;  %v2760_v17 = vpop.eup %2759 }
 0x4e2   : > { %2761 = vrcp.f32 %v2062_v35 }
 0x4e4   : > { %v1792_v13 = vpop.f32.mrf.mxu2 }
 0x4e5   : > { %v1833_v43 = vpop.f32.mrf.mxu3 }
 0x4e6   : > { %v1834_v44 = vadd.f32 %v1833_v43, %v1792_v13 }
 0x4e8   : > { %v2063_v53 = vmax.f32 %v1834_v44, 1e-30  ;;  %v2762_v10 = vpop.eup %2761 }
 0x4ea   : > { %2763 = vrcp.f32 %v2063_v53 }
 0x4f0   : > { %v1996_v33 = vpop.f32.mrf.mxu0  ;;  %v2037_v30 = vpop.f32.mrf.mxu1 }
 0x4f1   : > { %v2038_v9 = vadd.f32 %v2037_v30, %v1996_v33  ;;  %v2764_v56 = vpop.eup %2763 }
 0x4f3   : > { %v4438_v27 = vmul.f32 %v2760_v17, %v2038_v9 }
 0x4f8   : > { %v1999_v61 = vpop.f32.mrf.mxu0  ;;  %v2040_v15 = vpop.f32.mrf.mxu1 }
 0x4f9   : > { %v2041_v57 = vadd.f32 %v2040_v15, %v1999_v61 }
 0x4fb   : > { %v2078_v46 = vmul.f32 %v2762_v10, %v2041_v57 }
 0x4fd   : > { %2095 = vrot.lane.b32.xlu2 %v2078_v46, %s2908_s20 }
 0x500   : > { %v2002_v11 = vpop.f32.mrf.mxu0  ;;  %v2043_v1 = vpop.f32.mrf.mxu1 }
 0x501   : > { %v2044_v39 = vadd.f32 %v2043_v1, %v2002_v11 }
 0x503   : > { %v2079_v59 = vmul.f32 %v2764_v56, %v2044_v39 }
 0x505   : > { %2097 = vrot.lane.b32.xlu1 %v2079_v59, %s2908_s20 }
 0x519   : > { %v2005_v20 = vpop.f32.mrf.mxu0 }
 0x51a   : > { %v2046_v37 = vpop.f32.mrf.mxu1 }
 0x51b   : > { %v2047_v38 = vadd.f32 %v2046_v37, %v2005_v20 }
 0x51f   : > { %v1795_v2 = vpop.f32.mrf.mxu2 }
 0x520   : > { %v1836_v22 = vpop.f32.mrf.mxu3 }
 0x521   : > { %v1837_v7 = vadd.f32 %v1836_v22, %v1795_v2 }
 0x523   : > { %v2064_v62 = vmax.f32 %v1837_v7, 1e-30 }
 0x525   : > { %2765 = vrcp.f32 %v2064_v62 }
 0x527   : > { %v2008_v34 = vpop.f32.mrf.mxu0 }
 0x528   : > { %v2049_v21 = vpop.f32.mrf.mxu1 }
 0x529   : > { %v2050_v24 = vadd.f32 %v2049_v21, %v2008_v34 }
 0x52b   : > { %v2766_v31 = vpop.eup %2765 }
 0x52c   : > { %v2080_v19 = vmul.f32 %v2766_v31, %v2047_v38 }
 0x52d   : > { %v1798_v58 = vpop.f32.mrf.mxu2 }
 0x52e   : > { %v1839_v54 = vpop.f32.mrf.mxu3  ;;  %2099 = vrot.lane.b32.xlu0 %v2080_v19, %s2908_s20 }
 0x52f   : > { %v1840_v60 = vadd.f32 %v1839_v54, %v1798_v58  ;;  %v2011_v49 = vpop.f32.mrf.mxu0 }
 0x530   : > { %v2052_v12 = vpop.f32.mrf.mxu1 }
 0x531   : > { %v2065_v14 = vmax.f32 %v1840_v60, 1e-30  ;;  %v2053_v0 = vadd.f32 %v2052_v12, %v2011_v49 }
 0x533   : > { %2767 = vrcp.f32 %v2065_v14 }
 0x535   : > { %v1801_v32 = vpop.f32.mrf.mxu2 }
 0x536   : > { %v1842_v23 = vpop.f32.mrf.mxu3 }
 0x537   : > { %v1843_v3 = vadd.f32 %v1842_v23, %v1801_v32  ;;  %v2014_v13 = vpop.f32.mrf.mxu0 }
 0x538   : > { %v2055_v43 = vpop.f32.mrf.mxu1 }
 0x539   : > { %v2768_v25 = vpop.eup %2767  ;;  %v2066_v6 = vmax.f32 %v1843_v3, 1e-30  ;;  %v2056_v53 = vadd.f32 %v2055_v43, %v2014_v13 }
 0x53a   : > { %v2081_v42 = vmul.f32 %v2768_v25, %v2050_v24 }
 0x53b   : > { %2769 = vrcp.f32 %v2066_v6 }
 0x53c   : > { %2101 = vrot.lane.b32.xlu2 %v2081_v42, %s2908_s20 }
 0x53d   : > { %v1804_v4 = vpop.f32.mrf.mxu2 }
 0x53e   : > { %v1845_v5 = vpop.f32.mrf.mxu3 }
 0x53f   : > { %v1846_v55 = vadd.f32 %v1845_v5, %v1804_v4  ;;  %v2017_v10 = vpop.f32.mrf.mxu0 }
 0x540   : > { %v2058_v46 = vpop.f32.mrf.mxu1 }
 0x541   : > { %v2770_v35 = vpop.eup %2769  ;;  %v2067_v33 = vmax.f32 %v1846_v55, 1e-30  ;;  %v2059_v11 = vadd.f32 %v2058_v46, %v2017_v10 }
 0x542   : > { %v2082_v30 = vmul.f32 %v2770_v35, %v2053_v0 }
 0x543   : > { %2771 = vrcp.f32 %v2067_v33 }
 0x544   : > { %2103 = vrot.lane.b32.xlu1 %v2082_v30, %s2908_s20 }
 0x545   : > { %v1807_v9 = vpop.f32.mrf.mxu2 }
 0x546   : > { %v1848_v17 = vpop.f32.mrf.mxu3 }
 0x547   : > { %v1849_v44 = vadd.f32 %v1848_v17, %v1807_v9 }
 0x549   : > { %v2772_v61 = vpop.eup %2771  ;;  %v2068_v15 = vmax.f32 %v1849_v44, 1e-30 }
 0x54a   : > { %v2083_v57 = vmul.f32 %v2772_v61, %v2056_v53 }
 0x54b   : > { %2773 = vrcp.f32 %v2068_v15 }
 0x54c   : > { %2105 = vrot.lane.b32.xlu0 %v2083_v57, %s2908_s20  ;;  %2093 = vrot.lane.b32.xlu1 %v4438_v27, %s2908_s20 }
 0x551   : > { %v2774_v1 = vpop.eup %2773 }
 0x552   : > { %v2084_v39 = vmul.f32 %v2774_v1, %v2059_v11 }
 0x554   : > { %2107 = vrot.lane.b32.xlu2 %v2084_v39, %s2908_s20  ;;  %s286_s20 = sand.u32 1, %s2895_s25  }
 0x555   : > { %s2307_s8 = sshll.u32 %s286_s20, 6  ;;  %s2212_s14 = scalar_lea.sflag [#allocation4], %s286_s20 }
 0x556   : > { %s288_s15 = scalar_lea.vmem [#allocation5], %s2307_s8 }
 0x557   : > { %v2096_v56 = vpop.permute.xlu2 %2095  ;;  %s2224_s22 = sshll.u32 %s288_s15, 4  ;;  %s2225_s22 = int_to_ptr.vmem [resolvable:$true] %s2224_s22 }
 0x558   : > { %v2118_v59 = vsel %vm342_vm0, %v4383_v28, %v2096_v56 }
 0x559   : > { %2423 = vmatmul.msk.f32.vlgmr.msrb.gmra.mxu2 %vm2137_vm1, %v2118_v59 }
 0x577   : > { %v2098_v2 = vpop.permute.xlu1 %2097 }
 0x578   : > { %v2119_v22 = vsel %vm342_vm0, %v4388_v50, %v2098_v2 }
 0x579   : > { %2424 = vmatmul.msk.f32.gmra.mxu2 %vm2137_vm1, %v2119_v22 }
 0x596   : > { %v2102_v62 = vpop.permute.xlu2 %2101 }
 0x597   : > { %v2121_v28 = vsel %vm342_vm0, %v4411_v51, %v2102_v62 }
 0x5a0   : > { %v2100_v27 = vpop.permute.xlu0 %2099 }
 0x5a1   : > { %v2120_v7 = vsel %vm342_vm0, %v4399_v8, %v2100_v27 }
 0x5a2   : > { %2425 = vmatmul.msk.f32.gmra.mxu2 %vm2137_vm1, %v2120_v7 }
 0x5aa   : > { %2426 = vmatmul.msk.f32.gmra.mxu2 %vm2137_vm1, %v2121_v28 }
 0x5ae   : > { %v2108_v51 = vpop.permute.xlu2 %2107 }
 0x5af   : > { %v2124_v31 = vsel %vm342_vm0, %v4424_v36, %v2108_v51 }
 0x5b6   : > { %v2104_v20 = vpop.permute.xlu1 %2103 }
 0x5b7   : > { %v2122_v50 = vsel %vm342_vm0, %v4415_v18, %v2104_v20  ;;  %v2678_v18 = vld [vmem:[%s4547_s3] ss:$0 sm:$0xff] }
 0x5b8   : > { %2427 = vmatmul.msk.f32.gmra.mxu2 %vm2137_vm1, %v2122_v50 }
 0x5be   : > { %v2106_v37 = vpop.permute.xlu0 %2105  ;;  %v2094_v38 = vpop.permute.xlu1 %2093 }
 0x5bf   : > { %v2123_v8 = vsel %vm342_vm0, %v4419_v16, %v2106_v37  ;;  %v2117_v63 = vsel %vm342_vm0, %v4380_v40, %v2094_v38 }
 0x5c0   : > { %2422 = vmatmul.msk.f32.vlgmr.msra.gmra.mxu0 %vm2137_vm1, %v2117_v63  ;;  %2428 = vmatmul.msk.f32.gmra.mxu2 %vm2137_vm1, %v2123_v8 }
 0x5c8   : > { %2429 = vmatmul.msk.f32.gmra.mxu2 %vm2137_vm1, %v2124_v31 }
 0x5dc   : > { %v2182_v16 = vpop.f32.mrf.mxu2 }
 0x5dd   : > { %v2183_v19 = vadd.f32 %v2678_v18, %v2182_v16 }
 0x5df   : > { %2204 = vst.msk [vmem:[%s288_s15 + $0x8] sm:$0xff] %vm342_vm0, %v2183_v19 }
 0x5fc   : > { %v2185_v40 = vpop.f32.mrf.mxu2 }
 0x5fd   : > { %v2186_v47 = vadd.f32 %v2678_v18, %v2185_v40 }
 0x5ff   : > { %2205 = vst.msk [vmem:[%s288_s15 + $0x10] sm:$0xff] %vm342_vm0, %v2186_v47 }
 0x625   : > { %v2188_v36 = vpop.f32.mrf.mxu2 }
 0x626   : > { %v2189_v52 = vadd.f32 %v2678_v18, %v2188_v36 }
 0x628   : > { %2206 = vst.msk [vmem:[%s288_s15 + $0x18] sm:$0xff] %vm342_vm0, %v2189_v52 }
 0x62d   : > { %v2191_v58 = vpop.f32.mrf.mxu2 }
 0x62e   : > { %v2192_v54 = vadd.f32 %v2678_v18, %v2191_v58 }
 0x630   : > { %2207 = vst.msk [vmem:[%s288_s15 + $0x20] sm:$0xff] %vm342_vm0, %v2192_v54 }
 0x63b   : > { %v2194_v45 = vpop.f32.mrf.mxu2 }
 0x63c   : > { %v2195_v34 = vadd.f32 %v2678_v18, %v2194_v45 }
 0x63d   : > { %v2179_v21 = vpop.f32.mrf.mxu0 }
 0x63e   : > { %2208 = vst.msk [vmem:[%s288_s15 + $0x28] sm:$0xff] %vm342_vm0, %v2195_v34  ;;  %v2180_v60 = vadd.f32 %v2678_v18, %v2179_v21 }
 0x640   : > { %2203 = vst.msk [vmem:[%s288_s15] sm:$0xff] %vm342_vm0, %v2180_v60 }
 0x643   : > { %v2197_v48 = vpop.f32.mrf.mxu2 }
 0x644   : > { %v2198_v14 = vadd.f32 %v2678_v18, %v2197_v48 }
 0x646   : > { %2209 = vst.msk [vmem:[%s288_s15 + $0x30] sm:$0xff] %vm342_vm0, %v2198_v14 }
 0x64b   : > { %v2200_v41 = vpop.f32.mrf.mxu2 }
 0x64c   : > { %v2201_v29 = vadd.f32 %v2678_v18, %v2200_v41 }
 0x64e   : > { %2210 = vst.msk [vmem:[%s288_s15 + $0x38] sm:$0xff] %vm342_vm0, %v2201_v29 }
 0x64f   : > { %2864 = shalt.err (!%p2861_p8)
}
 0x650   : > { %s2911_s20 = smov 128   ;;  %s2912_s15 = smov 8  }
 0x651   : > { %2465 = dma.vmem_to_hbm [thread:$0]  (%p2991_p5), %s2225_s22, 1024, %s2227_s21, %s2212_s14, %s2911_s20, %s2911_s20, %s2912_s15  }
 0x652 PF: > { %p2477_p9 = scmp.ge.s32.totalorder %s2903_s27, 2  ;;  %s2241_s17 = sand.u32 1, %s2891_s24  }
 0x653   : > { %s2242_s19 = scalar_lea.sflag [#allocation4], %s2241_s17 }
 0x654   : > { %p2472_p10 = pnand %p2477_p9, %p2995_p6 }
 0x656   : > { %p2473_p11 = pneg %p2472_p10 }
 0x658   : > { %2886 = dma.done.wait (%p2473_p11), %s2242_s19, 1024  }
 0x659   : > { %2888 = vsyncadd (%p2473_p11), %s2242_s19, 4294966272  ;;  %p18_p12 = scmp.ge.s32.totalorder %s2978_s30, 4   ;;  %s4735_s24 = smov %s2895_s25 }
 0x65a   : > { %s4736_s25 = smov %s2899_s26  ;;  %s4737_s26 = smov %s2989_s10 }
 0x65b   : > { %s4738_s27 = smov %s2978_s30  ;;  %20 = sbr.rel (!%p18_p12) target bundleno = 4 (0x4), region = 88 }
 0x660   :  { %2248 = vsyncpa [#allocation3], 1 }
 0x661   :  { %2250 = vsyncpa [#allocation3 + $0x1], 1 }
 0x662   :  { %2251 = vsyncpa [#allocation4], 1 }
 0x663   :  { %2253 = vsyncpa [#allocation4 + $0x1], 1 }

</bundles_post_ra>
